<compile_context>
chip_gen: v7x
topology: tpu7x:2x2x1
jax: 0.10.0
libtpu: 0.0.40
codegen_flags: <defaults>
</compile_context>

<pallas_src>
import math
from functools import partial

import jax
import jax.numpy as jnp
from jax import lax
from jax.experimental import pallas as pl
from jax.experimental.pallas import tpu as pltpu

_LANES = 128                     # channel dims padded to multiples of the lane width
_VMEM_LIMIT = 32 * 1024 * 1024   # scoped-VMEM budget safe on v5e/v6e/v7x


def _round_up(x, m):
    return (x + m - 1) // m * m


def _cout_tile(cout_p):
    # Lane-dense output-channel tile (multiple of 128), capped at 256 to bound VMEM on v7x.
    return 256 if cout_p % 256 == 0 else 128


# ---------------------------------------------------------------------------
# Kernel bodies
# ---------------------------------------------------------------------------
def _conv1_kernel(x_ref, s1_ref, b1_ref, w_ref, s2_ref, b2_ref, o_ref,
                  a_scr, acc_ref, *, Ho, Wo, stride, interior):
    """conv1 (3x3, stride) with fused bn1+relu prologue and bn2+relu epilogue.

    x_ref  : (1, s*s, Hh, Wh, Cin_p) bf16   phase-decomposed, spatially padded raw input
    a_scr  : (s*s, Hh, Wh, Cin_p)   bf16    VMEM scratch holding relu(bn1(x)) with zero halo
    acc_ref: (Ho*Wo, tco)           f32     VMEM accumulator
    o_ref  : (1, Ho+2, Wo+2, tco)   bf16    padded output (zero halo written directly)
    """
    s = stride
    nph, Hh, Wh, cin = a_scr.shape
    tco = acc_ref.shape[-1]

    # --- bn1 + relu prologue into zero-haloed phase slabs (VMEM only, never HBM) ---------
    s1 = s1_ref[...].reshape(1, 1, cin)
    b1 = b1_ref[...].reshape(1, 1, cin)
    for p in range(nph):
        q0, q1, r0, r1 = interior[p]          # static interior bounds of this phase slab
        xin = x_ref[0, p, q0:q1, r0:r1, :].astype(jnp.float32)
        a_scr[p, q0:q1, r0:r1, :] = jnp.maximum(xin * s1 + b1, 0.0).astype(a_scr.dtype)
        # zero only the (small) halo strips of this slab
        if q0 > 0:
            a_scr[p, 0:q0, :, :] = jnp.zeros((q0, Wh, cin), a_scr.dtype)
        if q1 < Hh:
            a_scr[p, q1:Hh, :, :] = jnp.zeros((Hh - q1, Wh, cin), a_scr.dtype)
        if r0 > 0:
            a_scr[p, q0:q1, 0:r0, :] = jnp.zeros((q1 - q0, r0, cin), a_scr.dtype)
        if r1 < Wh:
            a_scr[p, q0:q1, r1:Wh, :] = jnp.zeros((q1 - q0, Wh - r1, cin), a_scr.dtype)

    # --- conv1: 9 accumulating MXU matmuls over dense static slices of the phase slabs ---
    acc_ref[...] = jnp.zeros_like(acc_ref)
    for dy in range(3):                       # static unroll: LLO sees all 9 matmul pushes
        for dx in range(3):
            p = (dy % s) * s + (dx % s)
            win = a_scr[p, dy // s:dy // s + Ho, dx // s:dx // s + Wo, :]
            acc_ref[...] += jnp.dot(win.reshape(Ho * Wo, cin), w_ref[dy * 3 + dx],
                                    preferred_element_type=jnp.float32)

    # --- bn2 + relu epilogue; write interior + only the 4 halo strips (no double store) ---
    h = jnp.maximum(acc_ref[...] * s2_ref[...] + b2_ref[...], 0.0)
    o_ref[0, 1:Ho + 1, 1:Wo + 1, :] = h.reshape(Ho, Wo, tco).astype(o_ref.dtype)
    o_ref[0, 0:1, :, :] = jnp.zeros((1, Wo + 2, tco), o_ref.dtype)
    o_ref[0, Ho + 1:Ho + 2, :, :] = jnp.zeros((1, Wo + 2, tco), o_ref.dtype)
    o_ref[0, 1:Ho + 1, 0:1, :] = jnp.zeros((Ho, 1, tco), o_ref.dtype)
    o_ref[0, 1:Ho + 1, Wo + 1:Wo + 2, :] = jnp.zeros((Ho, 1, tco), o_ref.dtype)


def _conv2_taps(h_ref, w_ref, acc_ref, Ho, Wo):
    """3x3 stride-1 conv over a zero-padded VMEM-resident image: 9 accumulating matmuls."""
    cmid = h_ref.shape[-1]
    acc_ref[...] = jnp.zeros_like(acc_ref)
    for dy in range(3):
        for dx in range(3):
            win = h_ref[0, dy:dy + Ho, dx:dx + Wo, :]
            acc_ref[...] += jnp.dot(win.reshape(Ho * Wo, cmid), w_ref[dy * 3 + dx],
                                    preferred_element_type=jnp.float32)


def _conv2_id_kernel(h_ref, w_ref, xres_ref, o_ref, acc_ref, *, Ho, Wo):
    # conv2 (3x3, stride 1) + identity residual fused into the epilogue.
    _conv2_taps(h_ref, w_ref, acc_ref, Ho, Wo)
    tco = acc_ref.shape[-1]
    res = xres_ref[0].astype(jnp.float32).reshape(Ho * Wo, tco)
    o_ref[...] = (acc_ref[...] + res).reshape(1, Ho, Wo, tco).astype(o_ref.dtype)


def _conv2_sc_kernel(h_ref, w_ref, xsel_ref, s1_ref, b1_ref, wsc_ref, o_ref, acc_ref,
                     *, Ho, Wo):
    # conv2 (3x3, stride 1) + 1x1 strided shortcut conv fused as a 10th matmul.
    # relu(bn1(x)) is recomputed here only on the strided-selected pixels (never in HBM).
    _conv2_taps(h_ref, w_ref, acc_ref, Ho, Wo)
    tco = acc_ref.shape[-1]
    cin = xsel_ref.shape[-1]
    a_sel = jnp.maximum(
        xsel_ref[0].astype(jnp.float32) * s1_ref[...].reshape(1, 1, cin)
        + b1_ref[...].reshape(1, 1, cin), 0.0).astype(jnp.bfloat16)
    acc_ref[...] += jnp.dot(a_sel.reshape(Ho * Wo, cin), wsc_ref[...],
                            preferred_element_type=jnp.float32)
    o_ref[...] = acc_ref[...].reshape(1, Ho, Wo, tco).astype(o_ref.dtype)


# ---------------------------------------------------------------------------
# pallas_call wrappers  (grid = (cout_tiles, batch): weight tile stays VMEM-resident)
# ---------------------------------------------------------------------------
def _conv1(x_ph, s1, b1, w1, s2, b2, *, stride, H, W, Ho, Wo):
    N, nph, Hh, Wh, Cin_p = x_ph.shape
    Cout_p = w1.shape[-1]
    tco = _cout_tile(Cout_p)
    n_co = Cout_p // tco

    # Static per-phase interior bounds: slab pixel (q, r) of phase (py, px) is padded pixel
    # (q*s+py, r*s+px); interior (non-halo) iff that padded index lies in [1, H] x [1, W].
    interior = []
    for py in range(stride):
        for px in range(stride):
            q0 = max(0, -(-(1 - py) // stride))
            q1 = min(Hh, (H - py) // stride + 1)
            r0 = max(0, -(-(1 - px) // stride))
            r1 = min(Wh, (W - px) // stride + 1)
            interior.append((q0, q1, r0, r1))

    kernel = partial(_conv1_kernel, Ho=Ho, Wo=Wo, stride=stride, interior=tuple(interior))

    flops = 2 * N * Ho * Wo * 9 * Cin_p * Cout_p
    bytes_acc = int(n_co * x_ph.size * 2 + w1.size * 2
                    + N * (Ho + 2) * (Wo + 2) * Cout_p * 2
                    + (s1.size + b1.size + s2.size + b2.size) * 4)

    return pl.pallas_call(
        kernel,
        out_shape=jax.ShapeDtypeStruct((N, Ho + 2, Wo + 2, Cout_p), jnp.bfloat16),
        grid=(n_co, N),
        in_specs=[
            pl.BlockSpec((1, nph, Hh, Wh, Cin_p), lambda j, n: (n, 0, 0, 0, 0)),
            pl.BlockSpec((1, Cin_p), lambda j, n: (0, 0)),
            pl.BlockSpec((1, Cin_p), lambda j, n: (0, 0)),
            pl.BlockSpec((9, Cin_p, tco), lambda j, n: (0, 0, j)),   # resident across batch
            pl.BlockSpec((1, tco), lambda j, n: (0, j)),
            pl.BlockSpec((1, tco), lambda j, n: (0, j)),
        ],
        out_specs=pl.BlockSpec((1, Ho + 2, Wo + 2, tco), lambda j, n: (n, 0, 0, j)),
        scratch_shapes=[pltpu.VMEM((nph, Hh, Wh, Cin_p), jnp.bfloat16),
                        pltpu.VMEM((Ho * Wo, tco), jnp.float32)],
        compiler_params=pltpu.CompilerParams(
            dimension_semantics=("parallel", "parallel"),
            vmem_limit_bytes=_VMEM_LIMIT),
        cost_estimate=pl.CostEstimate(flops=flops, transcendentals=0,
                                      bytes_accessed=bytes_acc),
    )(x_ph, s1, b1, w1, s2, b2)


def _conv2_id(h_pad, w2, x_res, *, Ho, Wo):
    N, _, _, Cmid_p = h_pad.shape
    Cout_p = w2.shape[-1]
    tco = _cout_tile(Cout_p)
    n_co = Cout_p // tco
    kernel = partial(_conv2_id_kernel, Ho=Ho, Wo=Wo)
    flops = 2 * N * Ho * Wo * 9 * Cmid_p * Cout_p
    bytes_acc = int(n_co * h_pad.size * 2 + w2.size * 2 + x_res.size * 2
                    + N * Ho * Wo * Cout_p * 4)
    return pl.pallas_call(
        kernel,
        out_shape=jax.ShapeDtypeStruct((N, Ho, Wo, Cout_p), jnp.float32),
        grid=(n_co, N),
        in_specs=[
            pl.BlockSpec((1, Ho + 2, Wo + 2, Cmid_p), lambda j, n: (n, 0, 0, 0)),
            pl.BlockSpec((9, Cmid_p, tco), lambda j, n: (0, 0, j)),
            pl.BlockSpec((1, Ho, Wo, tco), lambda j, n: (n, 0, 0, j)),
        ],
        out_specs=pl.BlockSpec((1, Ho, Wo, tco), lambda j, n: (n, 0, 0, j)),
        scratch_shapes=[pltpu.VMEM((Ho * Wo, tco), jnp.float32)],
        compiler_params=pltpu.CompilerParams(
            dimension_semantics=("parallel", "parallel"),
            vmem_limit_bytes=_VMEM_LIMIT),
        cost_estimate=pl.CostEstimate(flops=flops, transcendentals=0,
                                      bytes_accessed=bytes_acc),
    )(h_pad, w2, x_res)


def _conv2_sc(h_pad, w2, x_sel, s1, b1, wsc, *, Ho, Wo):
    N, _, _, Cmid_p = h_pad.shape
    Cin_p = x_sel.shape[-1]
    Cout_p = w2.shape[-1]
    tco = _cout_tile(Cout_p)
    n_co = Cout_p // tco
    kernel = partial(_conv2_sc_kernel, Ho=Ho, Wo=Wo)
    flops = 2 * N * Ho * Wo * (9 * Cmid_p + Cin_p) * Cout_p
    bytes_acc = int(n_co * (h_pad.size + x_sel.size) * 2 + (w2.size + wsc.size) * 2
                    + N * Ho * Wo * Cout_p * 4 + (s1.size + b1.size) * 4)
    return pl.pallas_call(
        kernel,
        out_shape=jax.ShapeDtypeStruct((N, Ho, Wo, Cout_p), jnp.float32),
        grid=(n_co, N),
        in_specs=[
            pl.BlockSpec((1, Ho + 2, Wo + 2, Cmid_p), lambda j, n: (n, 0, 0, 0)),
            pl.BlockSpec((9, Cmid_p, tco), lambda j, n: (0, 0, j)),
            pl.BlockSpec((1, Ho, Wo, Cin_p), lambda j, n: (n, 0, 0, 0)),
            pl.BlockSpec((1, Cin_p), lambda j, n: (0, 0)),
            pl.BlockSpec((1, Cin_p), lambda j, n: (0, 0)),
            pl.BlockSpec((Cin_p, tco), lambda j, n: (0, j)),
        ],
        out_specs=pl.BlockSpec((1, Ho, Wo, tco), lambda j, n: (n, 0, 0, j)),
        scratch_shapes=[pltpu.VMEM((Ho * Wo, tco), jnp.float32)],
        compiler_params=pltpu.CompilerParams(
            dimension_semantics=("parallel", "parallel"),
            vmem_limit_bytes=_VMEM_LIMIT),
        cost_estimate=pl.CostEstimate(flops=flops, transcendentals=0,
                                      bytes_accessed=bytes_acc),
    )(h_pad, w2, x_sel, s1, b1, wsc)


# ---------------------------------------------------------------------------
# BN folding + BasicBlock forward
# ---------------------------------------------------------------------------
def _fold_bn(gamma, beta, mean, var, eps=1e-5):
    scale = gamma / jnp.sqrt(var + eps)
    bias = beta - mean * scale
    return scale, bias


def basic_block_forward(x_nchw, params, stride, drop_rate=0.0):
    equal_in_out = "wsc" not in params
    if equal_in_out:
        assert stride == 1, "identity shortcut requires stride == 1"
    # TODO(synk): drop_rate > 0 training-mode dropout is not implemented (no-op here).

    x = jnp.transpose(x_nchw, (0, 2, 3, 1))                  # NCHW -> NHWC (boundary only)
    N, H, W, Cin = x.shape
    Cout = params["w1"].shape[-1]
    Cin_p, Cout_p = _round_up(Cin, _LANES), _round_up(Cout, _LANES)
    Ho = (H - 1) // stride + 1
    Wo = (W - 1) // stride + 1

    # Lane-dense channel padding; bf16 activations feed the kernels (f32 accumulation inside).
    x_p = jnp.pad(x, ((0, 0), (0, 0), (0, 0), (0, Cin_p - Cin))).astype(jnp.bfloat16)

    s1, b1 = _fold_bn(*params["bn1"])
    s1 = jnp.pad(s1, (0, Cin_p - Cin)).reshape(1, Cin_p).astype(jnp.float32)
    b1 = jnp.pad(b1, (0, Cin_p - Cin)).reshape(1, Cin_p).astype(jnp.float32)
    s2, b2 = _fold_bn(*params["bn2"])
    s2 = jnp.pad(s2, (0, Cout_p - Cout)).reshape(1, Cout_p).astype(jnp.float32)
    b2 = jnp.pad(b2, (0, Cout_p - Cout)).reshape(1, Cout_p).astype(jnp.float32)

    w1 = jnp.pad(params["w1"], ((0, 0), (0, 0), (0, Cin_p - Cin), (0, Cout_p - Cout)))
    w1 = w1.reshape(9, Cin_p, Cout_p).astype(jnp.bfloat16)
    w2 = jnp.pad(params["w2"], ((0, 0), (0, 0), (0, Cout_p - Cout), (0, Cout_p - Cout)))
    w2 = w2.reshape(9, Cout_p, Cout_p).astype(jnp.bfloat16)

    # Phase-decomposed, spatially zero-padded raw input (pure XLA layout plumbing: pad +
    # reshape + transpose).  For stride s, phase p = py*s+px holds padded pixel (q*s+py,
    # r*s+px), so every conv1 tap inside the kernel is a dense static slice (no strided or
    # masked loads).  bn1+relu and the post-BN zero halo are applied inside the kernel.
    s = stride
    Hh, Wh = -(-(H + 2) // s), -(-(W + 2) // s)
    x_sp = jnp.pad(x_p, ((0, 0), (1, Hh * s - H - 1), (1, Wh * s - W - 1), (0, 0)))
    x_ph = (x_sp.reshape(N, Hh, s, Wh, s, Cin_p)
            .transpose(0, 2, 4, 1, 3, 5)
            .reshape(N, s * s, Hh, Wh, Cin_p))

    # 1) conv1 (3x3, stride) with fused bn1+relu prologue and bn2+relu epilogue.
    h_pad = _conv1(x_ph, s1, b1, w1, s2, b2, stride=s, H=H, W=W, Ho=Ho, Wo=Wo)

    # 2) conv2 (3x3, stride 1) with the residual fused into the epilogue.
    if equal_in_out:
        out = _conv2_id(h_pad, w2, x_p, Ho=Ho, Wo=Wo)
    else:
        wsc = params["wsc"].reshape(Cin, Cout)
        wsc = jnp.pad(wsc, ((0, Cin_p - Cin), (0, Cout_p - Cout))).astype(jnp.bfloat16)
        x_sel = x_p[:, ::s, ::s, :]     # strided pixel select at the XLA boundary (cheap)
        out = _conv2_sc(h_pad, w2, x_sel, s1, b1, wsc, Ho=Ho, Wo=Wo)

    out = out[:, :, :, :Cout]
    return jnp.transpose(out, (0, 3, 1, 2))                 # NHWC -> NCHW (PyTorch interface)


# ---------------------------------------------------------------------------
# Pure-JAX reference (verification only)
# ---------------------------------------------------------------------------
def _ref_block(x_nchw, params, stride):
    equal_in_out = "wsc" not in params
    x = jnp.transpose(x_nchw, (0, 2, 3, 1)).astype(jnp.float32)

    def bn_relu(v, stats):
        sc, bi = _fold_bn(*stats)
        return jnp.maximum(v * sc + bi, 0.0)

    a = bn_relu(x, params["bn1"])
    h = lax.conv_general_dilated(
        a, params["w1"], (stride, stride), ((1, 1), (1, 1)),
        dimension_numbers=("NHWC", "HWIO", "NHWC"))
    h = bn_relu(h, params["bn2"])
    h = lax.conv_general_dilated(
        h, params["w2"], (1, 1), ((1, 1), (1, 1)),
        dimension_numbers=("NHWC", "HWIO", "NHWC"))
    if equal_in_out:
        res = x
    else:
        res = lax.conv_general_dilated(
            a, params["wsc"], (stride, stride), ((0, 0), (0, 0)),
            dimension_numbers=("NHWC", "HWIO", "NHWC"))
    return jnp.transpose(res + h, (0, 3, 1, 2))


# ---------------------------------------------------------------------------
# Deterministic parameter construction
# ---------------------------------------------------------------------------
def make_params(key, in_planes, out_planes):
    ks = jax.random.split(key, 5)

    def bn(k, c):
        k1, k2, k3, k4 = jax.random.split(k, 4)
        gamma = 1.0 + 0.1 * jax.random.normal(k1, (c,), jnp.float32)
        beta = 0.1 * jax.random.normal(k2, (c,), jnp.float32)
        mean = 0.1 * jax.random.normal(k3, (c,), jnp.float32)
        var = 0.5 + jax.random.uniform(k4, (c,), jnp.float32)
        return (gamma, beta, mean, var)

    p = {}
    p["bn1"] = bn(ks[0], in_planes)
    p["w1"] = jax.random.normal(ks[1], (3, 3, in_planes, out_planes), jnp.float32) * (
        1.0 / math.sqrt(9 * in_planes))
    p["bn2"] = bn(ks[2], out_planes)
    p["w2"] = jax.random.normal(ks[3], (3, 3, out_planes, out_planes), jnp.float32) * (
        1.0 / math.sqrt(9 * out_planes))
    if in_planes != out_planes:
        p["wsc"] = jax.random.normal(ks[4], (1, 1, in_planes, out_planes), jnp.float32) * (
            1.0 / math.sqrt(in_planes))
    return p


if __name__ == "__main__":
    key = jax.random.PRNGKey(0)
    kx, kp1, kp2 = jax.random.split(key, 3)

    # Input matching PyTorch NCHW convention.
    x = jax.random.normal(kx, (2, 4, 16, 16), jnp.float32)

    # Case 1: in_planes != out_planes (4 -> 8), stride 2 -> fused 1x1-conv shortcut.
    p1 = make_params(kp1, 4, 8)
    y1 = jax.block_until_ready(basic_block_forward(x, p1, stride=2))
    r1 = _ref_block(x, p1, stride=2)
    assert y1.shape == (2, 8, 8, 8), y1.shape
    assert jnp.allclose(y1, r1, atol=1e-1, rtol=1e-1), (
        "mismatch (shortcut path), max err %f" % float(jnp.max(jnp.abs(y1 - r1))))

    # Case 2: equalInOut (4 -> 4), stride 1 -> identity residual fused into conv2.
    p2 = make_params(kp2, 4, 4)
    y2 = jax.block_until_ready(basic_block_forward(x, p2, stride=1))
    r2 = _ref_block(x, p2, stride=1)
    assert y2.shape == (2, 4, 16, 16), y2.shape
    assert jnp.allclose(y2, r2, atol=1e-1, rtol=1e-1), (
        "mismatch (identity path), max err %f" % float(jnp.max(jnp.abs(y2 - r2))))

    print("KERNEL_OK")
</pallas_src>

<mosaic_0001>
module attributes {stable_mosaic.version = 11 : i64} {
  func.func @_conv1_kernel(%arg0: i32, %arg1: i32, %arg2: memref<1x4x9x9x128xbf16, #tpu.memory_space<vmem>>, %arg3: memref<1x128xf32, #tpu.memory_space<vmem>>, %arg4: memref<1x128xf32, #tpu.memory_space<vmem>>, %arg5: memref<9x128x128xbf16, #tpu.memory_space<vmem>>, %arg6: memref<1x128xf32, #tpu.memory_space<vmem>>, %arg7: memref<1x128xf32, #tpu.memory_space<vmem>>, %arg8: memref<1x10x10x128xbf16, #tpu.memory_space<vmem>>, %arg9: memref<4x9x9x128xbf16, #tpu.memory_space<vmem>>, %arg10: memref<64x128xf32, #tpu.memory_space<vmem>>) attributes {dimension_semantics = [#tpu.dimension_semantics<parallel>, #tpu.dimension_semantics<parallel>], iteration_bounds = array<i64: 1, 2>, scalar_prefetch = 0 : i64, scratch_operands = 2 : i64, tpu.core_type = #tpu.core_type<tc>, window_params = [{transform_indices = @transform_0, window_bounds = array<i64: 1, 4, 9, 9, 128>}, {pipeline_mode = #tpu.pipeline_mode<synchronous>, transform_indices = @transform_1, window_bounds = array<i64: 1, 128>}, {pipeline_mode = #tpu.pipeline_mode<synchronous>, transform_indices = @transform_2, window_bounds = array<i64: 1, 128>}, {transform_indices = @transform_3, window_bounds = array<i64: 9, 128, 128>}, {transform_indices = @transform_4, window_bounds = array<i64: 1, 128>}, {transform_indices = @transform_5, window_bounds = array<i64: 1, 128>}, {transform_indices = @transform_6, window_bounds = array<i64: 1, 10, 10, 128>}]} {
    %c0 = arith.constant 0 : index
    %c0_0 = arith.constant 0 : index
    %0 = vector.load %arg3[%c0, %c0_0] : memref<1x128xf32, #tpu.memory_space<vmem>>, vector<1x128xf32>
    %1 = vector.shape_cast %0 : vector<1x128xf32> to vector<1x1x128xf32>
    %c0_1 = arith.constant 0 : index
    %c0_2 = arith.constant 0 : index
    %2 = vector.load %arg4[%c0_1, %c0_2] : memref<1x128xf32, #tpu.memory_space<vmem>>, vector<1x128xf32>
    %3 = vector.shape_cast %2 : vector<1x128xf32> to vector<1x1x128xf32>
    %c0_3 = arith.constant 0 : index
    %c0_4 = arith.constant 0 : index
    %c1 = arith.constant 1 : index
    %c1_5 = arith.constant 1 : index
    %c0_6 = arith.constant 0 : index
    %4 = vector.load %arg2[%c0_3, %c0_4, %c1, %c1_5, %c0_6] : memref<1x4x9x9x128xbf16, #tpu.memory_space<vmem>>, vector<1x1x8x8x128xbf16>
    %5 = vector.shape_cast %4 : vector<1x1x8x8x128xbf16> to vector<8x8x128xbf16>
    %6 = arith.extf %5 : vector<8x8x128xbf16> to vector<8x8x128xf32>
    %7 = vector.broadcast %1 : vector<1x1x128xf32> to vector<8x8x128xf32>
    %8 = arith.mulf %6, %7 : vector<8x8x128xf32>
    %9 = vector.broadcast %3 : vector<1x1x128xf32> to vector<8x8x128xf32>
    %10 = arith.addf %8, %9 : vector<8x8x128xf32>
    %cst = arith.constant 0.000000e+00 : f32
    %11 = vector.broadcast %cst : f32 to vector<8x8x128xf32>
    %12 = arith.maximumf %10, %11 : vector<8x8x128xf32>
    %13 = arith.truncf %12 : vector<8x8x128xf32> to vector<8x8x128xbf16>
    %c0_7 = arith.constant 0 : index
    %c1_8 = arith.constant 1 : index
    %c1_9 = arith.constant 1 : index
    %c0_10 = arith.constant 0 : index
    %14 = vector.load %arg9[%c0_7, %c1_8, %c1_9, %c0_10] : memref<4x9x9x128xbf16, #tpu.memory_space<vmem>>, vector<1x8x8x128xbf16>
    %15 = vector.shape_cast %14 : vector<1x8x8x128xbf16> to vector<8x8x128xbf16>
    %16 = vector.shape_cast %13 : vector<8x8x128xbf16> to vector<1x8x8x128xbf16>
    tpu.vector_store %arg9[%c0_7, %c1_8, %c1_9, %c0_10], %16 {strides = array<i32>} : memref<4x9x9x128xbf16, #tpu.memory_space<vmem>>, vector<1x8x8x128xbf16>,
    %cst_11 = arith.constant 0.000000e+00 : bf16
    %17 = vector.broadcast %cst_11 : bf16 to vector<1x9x128xbf16>
    %c0_12 = arith.constant 0 : index
    %c0_13 = arith.constant 0 : index
    %c0_14 = arith.constant 0 : index
    %c0_15 = arith.constant 0 : index
    %18 = vector.load %arg9[%c0_12, %c0_13, %c0_14, %c0_15] : memref<4x9x9x128xbf16, #tpu.memory_space<vmem>>, vector<1x1x9x128xbf16>
    %19 = vector.shape_cast %18 : vector<1x1x9x128xbf16> to vector<1x9x128xbf16>
    %20 = vector.shape_cast %17 : vector<1x9x128xbf16> to vector<1x1x9x128xbf16>
    tpu.vector_store %arg9[%c0_12, %c0_13, %c0_14, %c0_15], %20 {strides = array<i32>} : memref<4x9x9x128xbf16, #tpu.memory_space<vmem>>, vector<1x1x9x128xbf16>,
    %cst_16 = arith.constant 0.000000e+00 : bf16
    %21 = vector.broadcast %cst_16 : bf16 to vector<8x1x128xbf16>
    %c0_17 = arith.constant 0 : index
    %c1_18 = arith.constant 1 : index
    %c0_19 = arith.constant 0 : index
    %c0_20 = arith.constant 0 : index
    %22 = vector.load %arg9[%c0_17, %c1_18, %c0_19, %c0_20] : memref<4x9x9x128xbf16, #tpu.memory_space<vmem>>, vector<1x8x1x128xbf16>
    %23 = vector.shape_cast %22 : vector<1x8x1x128xbf16> to vector<8x1x128xbf16>
    %24 = vector.shape_cast %21 : vector<8x1x128xbf16> to vector<1x8x1x128xbf16>
    tpu.vector_store %arg9[%c0_17, %c1_18, %c0_19, %c0_20], %24 {strides = array<i32>} : memref<4x9x9x128xbf16, #tpu.memory_space<vmem>>, vector<1x8x1x128xbf16>,
    %c0_21 = arith.constant 0 : index
    %c1_22 = arith.constant 1 : index
    %c1_23 = arith.constant 1 : index
    %c0_24 = arith.constant 0 : index
    %c0_25 = arith.constant 0 : index
    %25 = vector.load %arg2[%c0_21, %c1_22, %c1_23, %c0_24, %c0_25] : memref<1x4x9x9x128xbf16, #tpu.memory_space<vmem>>, vector<1x1x8x8x128xbf16>
    %26 = vector.shape_cast %25 : vector<1x1x8x8x128xbf16> to vector<8x8x128xbf16>
    %27 = arith.extf %26 : vector<8x8x128xbf16> to vector<8x8x128xf32>
    %28 = vector.broadcast %1 : vector<1x1x128xf32> to vector<8x8x128xf32>
    %29 = arith.mulf %27, %28 : vector<8x8x128xf32>
    %30 = vector.broadcast %3 : vector<1x1x128xf32> to vector<8x8x128xf32>
    %31 = arith.addf %29, %30 : vector<8x8x128xf32>
    %cst_26 = arith.constant 0.000000e+00 : f32
    %32 = vector.broadcast %cst_26 : f32 to vector<8x8x128xf32>
    %33 = arith.maximumf %31, %32 : vector<8x8x128xf32>
    %34 = arith.truncf %33 : vector<8x8x128xf32> to vector<8x8x128xbf16>
    %c1_27 = arith.constant 1 : index
    %c1_28 = arith.constant 1 : index
    %c0_29 = arith.constant 0 : index
    %c0_30 = arith.constant 0 : index
    %35 = vector.load %arg9[%c1_27, %c1_28, %c0_29, %c0_30] : memref<4x9x9x128xbf16, #tpu.memory_space<vmem>>, vector<1x8x8x128xbf16>
    %36 = vector.shape_cast %35 : vector<1x8x8x128xbf16> to vector<8x8x128xbf16>
    %37 = vector.shape_cast %34 : vector<8x8x128xbf16> to vector<1x8x8x128xbf16>
    tpu.vector_store %arg9[%c1_27, %c1_28, %c0_29, %c0_30], %37 {strides = array<i32>} : memref<4x9x9x128xbf16, #tpu.memory_space<vmem>>, vector<1x8x8x128xbf16>,
    %cst_31 = arith.constant 0.000000e+00 : bf16
    %38 = vector.broadcast %cst_31 : bf16 to vector<1x9x128xbf16>
    %c1_32 = arith.constant 1 : index
    %c0_33 = arith.constant 0 : index
    %c0_34 = arith.constant 0 : index
    %c0_35 = arith.constant 0 : index
    %39 = vector.load %arg9[%c1_32, %c0_33, %c0_34, %c0_35] : memref<4x9x9x128xbf16, #tpu.memory_space<vmem>>, vector<1x1x9x128xbf16>
    %40 = vector.shape_cast %39 : vector<1x1x9x128xbf16> to vector<1x9x128xbf16>
    %41 = vector.shape_cast %38 : vector<1x9x128xbf16> to vector<1x1x9x128xbf16>
    tpu.vector_store %arg9[%c1_32, %c0_33, %c0_34, %c0_35], %41 {strides = array<i32>} : memref<4x9x9x128xbf16, #tpu.memory_space<vmem>>, vector<1x1x9x128xbf16>,
    %cst_36 = arith.constant 0.000000e+00 : bf16
    %42 = vector.broadcast %cst_36 : bf16 to vector<8x1x128xbf16>
    %c1_37 = arith.constant 1 : index
    %c1_38 = arith.constant 1 : index
    %c8 = arith.constant 8 : index
    %c0_39 = arith.constant 0 : index
    %43 = vector.load %arg9[%c1_37, %c1_38, %c8, %c0_39] : memref<4x9x9x128xbf16, #tpu.memory_space<vmem>>, vector<1x8x1x128xbf16>
    %44 = vector.shape_cast %43 : vector<1x8x1x128xbf16> to vector<8x1x128xbf16>
    %45 = vector.shape_cast %42 : vector<8x1x128xbf16> to vector<1x8x1x128xbf16>
    tpu.vector_store %arg9[%c1_37, %c1_38, %c8, %c0_39], %45 {strides = array<i32>} : memref<4x9x9x128xbf16, #tpu.memory_space<vmem>>, vector<1x8x1x128xbf16>,
    %c0_40 = arith.constant 0 : index
    %c2 = arith.constant 2 : index
    %c0_41 = arith.constant 0 : index
    %c1_42 = arith.constant 1 : index
    %c0_43 = arith.constant 0 : index
    %46 = vector.load %arg2[%c0_40, %c2, %c0_41, %c1_42, %c0_43] : memref<1x4x9x9x128xbf16, #tpu.memory_space<vmem>>, vector<1x1x8x8x128xbf16>
    %47 = vector.shape_cast %46 : vector<1x1x8x8x128xbf16> to vector<8x8x128xbf16>
    %48 = arith.extf %47 : vector<8x8x128xbf16> to vector<8x8x128xf32>
    %49 = vector.broadcast %1 : vector<1x1x128xf32> to vector<8x8x128xf32>
    %50 = arith.mulf %48, %49 : vector<8x8x128xf32>
    %51 = vector.broadcast %3 : vector<1x1x128xf32> to vector<8x8x128xf32>
    %52 = arith.addf %50, %51 : vector<8x8x128xf32>
    %cst_44 = arith.constant 0.000000e+00 : f32
    %53 = vector.broadcast %cst_44 : f32 to vector<8x8x128xf32>
    %54 = arith.maximumf %52, %53 : vector<8x8x128xf32>
    %55 = arith.truncf %54 : vector<8x8x128xf32> to vector<8x8x128xbf16>
    %c2_45 = arith.constant 2 : index
    %c0_46 = arith.constant 0 : index
    %c1_47 = arith.constant 1 : index
    %c0_48 = arith.constant 0 : index
    %56 = vector.load %arg9[%c2_45, %c0_46, %c1_47, %c0_48] : memref<4x9x9x128xbf16, #tpu.memory_space<vmem>>, vector<1x8x8x128xbf16>
    %57 = vector.shape_cast %56 : vector<1x8x8x128xbf16> to vector<8x8x128xbf16>
    %58 = vector.shape_cast %55 : vector<8x8x128xbf16> to vector<1x8x8x128xbf16>
    tpu.vector_store %arg9[%c2_45, %c0_46, %c1_47, %c0_48], %58 {strides = array<i32>} : memref<4x9x9x128xbf16, #tpu.memory_space<vmem>>, vector<1x8x8x128xbf16>,
    %cst_49 = arith.constant 0.000000e+00 : bf16
    %59 = vector.broadcast %cst_49 : bf16 to vector<1x9x128xbf16>
    %c2_50 = arith.constant 2 : index
    %c8_51 = arith.constant 8 : index
    %c0_52 = arith.constant 0 : index
    %c0_53 = arith.constant 0 : index
    %60 = vector.load %arg9[%c2_50, %c8_51, %c0_52, %c0_53] : memref<4x9x9x128xbf16, #tpu.memory_space<vmem>>, vector<1x1x9x128xbf16>
    %61 = vector.shape_cast %60 : vector<1x1x9x128xbf16> to vector<1x9x128xbf16>
    %62 = vector.shape_cast %59 : vector<1x9x128xbf16> to vector<1x1x9x128xbf16>
    tpu.vector_store %arg9[%c2_50, %c8_51, %c0_52, %c0_53], %62 {strides = array<i32>} : memref<4x9x9x128xbf16, #tpu.memory_space<vmem>>, vector<1x1x9x128xbf16>,
    %cst_54 = arith.constant 0.000000e+00 : bf16
    %63 = vector.broadcast %cst_54 : bf16 to vector<8x1x128xbf16>
    %c2_55 = arith.constant 2 : index
    %c0_56 = arith.constant 0 : index
    %c0_57 = arith.constant 0 : index
    %c0_58 = arith.constant 0 : index
    %64 = vector.load %arg9[%c2_55, %c0_56, %c0_57, %c0_58] : memref<4x9x9x128xbf16, #tpu.memory_space<vmem>>, vector<1x8x1x128xbf16>
    %65 = vector.shape_cast %64 : vector<1x8x1x128xbf16> to vector<8x1x128xbf16>
    %66 = vector.shape_cast %63 : vector<8x1x128xbf16> to vector<1x8x1x128xbf16>
    tpu.vector_store %arg9[%c2_55, %c0_56, %c0_57, %c0_58], %66 {strides = array<i32>} : memref<4x9x9x128xbf16, #tpu.memory_space<vmem>>, vector<1x8x1x128xbf16>,
    %c0_59 = arith.constant 0 : index
    %c3 = arith.constant 3 : index
    %c0_60 = arith.constant 0 : index
    %c0_61 = arith.constant 0 : index
    %c0_62 = arith.constant 0 : index
    %67 = vector.load %arg2[%c0_59, %c3, %c0_60, %c0_61, %c0_62] : memref<1x4x9x9x128xbf16, #tpu.memory_space<vmem>>, vector<1x1x8x8x128xbf16>
    %68 = vector.shape_cast %67 : vector<1x1x8x8x128xbf16> to vector<8x8x128xbf16>
    %69 = arith.extf %68 : vector<8x8x128xbf16> to vector<8x8x128xf32>
    %70 = vector.broadcast %1 : vector<1x1x128xf32> to vector<8x8x128xf32>
    %71 = arith.mulf %69, %70 : vector<8x8x128xf32>
    %72 = vector.broadcast %3 : vector<1x1x128xf32> to vector<8x8x128xf32>
    %73 = arith.addf %71, %72 : vector<8x8x128xf32>
    %cst_63 = arith.constant 0.000000e+00 : f32
    %74 = vector.broadcast %cst_63 : f32 to vector<8x8x128xf32>
    %75 = arith.maximumf %73, %74 : vector<8x8x128xf32>
    %76 = arith.truncf %75 : vector<8x8x128xf32> to vector<8x8x128xbf16>
    %c3_64 = arith.constant 3 : index
    %c0_65 = arith.constant 0 : index
    %c0_66 = arith.constant 0 : index
    %c0_67 = arith.constant 0 : index
    %77 = vector.load %arg9[%c3_64, %c0_65, %c0_66, %c0_67] : memref<4x9x9x128xbf16, #tpu.memory_space<vmem>>, vector<1x8x8x128xbf16>
    %78 = vector.shape_cast %77 : vector<1x8x8x128xbf16> to vector<8x8x128xbf16>
    %79 = vector.shape_cast %76 : vector<8x8x128xbf16> to vector<1x8x8x128xbf16>
    tpu.vector_store %arg9[%c3_64, %c0_65, %c0_66, %c0_67], %79 {strides = array<i32>} : memref<4x9x9x128xbf16, #tpu.memory_space<vmem>>, vector<1x8x8x128xbf16>,
    %cst_68 = arith.constant 0.000000e+00 : bf16
    %80 = vector.broadcast %cst_68 : bf16 to vector<1x9x128xbf16>
    %c3_69 = arith.constant 3 : index
    %c8_70 = arith.constant 8 : index
    %c0_71 = arith.constant 0 : index
    %c0_72 = arith.constant 0 : index
    %81 = vector.load %arg9[%c3_69, %c8_70, %c0_71, %c0_72] : memref<4x9x9x128xbf16, #tpu.memory_space<vmem>>, vector<1x1x9x128xbf16>
    %82 = vector.shape_cast %81 : vector<1x1x9x128xbf16> to vector<1x9x128xbf16>
    %83 = vector.shape_cast %80 : vector<1x9x128xbf16> to vector<1x1x9x128xbf16>
    tpu.vector_store %arg9[%c3_69, %c8_70, %c0_71, %c0_72], %83 {strides = array<i32>} : memref<4x9x9x128xbf16, #tpu.memory_space<vmem>>, vector<1x1x9x128xbf16>,
    %cst_73 = arith.constant 0.000000e+00 : bf16
    %84 = vector.broadcast %cst_73 : bf16 to vector<8x1x128xbf16>
    %c3_74 = arith.constant 3 : index
    %c0_75 = arith.constant 0 : index
    %c8_76 = arith.constant 8 : index
    %c0_77 = arith.constant 0 : index
    %85 = vector.load %arg9[%c3_74, %c0_75, %c8_76, %c0_77] : memref<4x9x9x128xbf16, #tpu.memory_space<vmem>>, vector<1x8x1x128xbf16>
    %86 = vector.shape_cast %85 : vector<1x8x1x128xbf16> to vector<8x1x128xbf16>
    %87 = vector.shape_cast %84 : vector<8x1x128xbf16> to vector<1x8x1x128xbf16>
    tpu.vector_store %arg9[%c3_74, %c0_75, %c8_76, %c0_77], %87 {strides = array<i32>} : memref<4x9x9x128xbf16, #tpu.memory_space<vmem>>, vector<1x8x1x128xbf16>,
    %cst_78 = arith.constant 0.000000e+00 : f32
    %88 = vector.broadcast %cst_78 : f32 to vector<64x128xf32>
    %c0_79 = arith.constant 0 : index
    %c0_80 = arith.constant 0 : index
    %89 = vector.load %arg10[%c0_79, %c0_80] : memref<64x128xf32, #tpu.memory_space<vmem>>, vector<64x128xf32>
    tpu.vector_store %arg10[%c0_79, %c0_80], %88 {strides = array<i32>} : memref<64x128xf32, #tpu.memory_space<vmem>>, vector<64x128xf32>,
    %c0_81 = arith.constant 0 : index
    %c0_82 = arith.constant 0 : index
    %c0_83 = arith.constant 0 : index
    %c0_84 = arith.constant 0 : index
    %90 = vector.load %arg9[%c0_81, %c0_82, %c0_83, %c0_84] : memref<4x9x9x128xbf16, #tpu.memory_space<vmem>>, vector<1x8x8x128xbf16>
    %91 = vector.shape_cast %90 : vector<1x8x8x128xbf16> to vector<8x8x128xbf16>
    %c0_85 = arith.constant 0 : index
    %c0_86 = arith.constant 0 : index
    %92 = vector.load %arg10[%c0_85, %c0_86] : memref<64x128xf32, #tpu.memory_space<vmem>>, vector<64x128xf32>
    %93 = vector.shape_cast %91 : vector<8x8x128xbf16> to vector<64x128xbf16>
    %c0_87 = arith.constant 0 : index
    %c0_88 = arith.constant 0 : index
    %c0_89 = arith.constant 0 : index
    %94 = vector.load %arg5[%c0_87, %c0_88, %c0_89] : memref<9x128x128xbf16, #tpu.memory_space<vmem>>, vector<1x128x128xbf16>
    %95 = vector.shape_cast %94 : vector<1x128x128xbf16> to vector<128x128xbf16>
    %cst_90 = arith.constant dense<0.000000e+00> : vector<64x128xf32>
    %96 = tpu.matmul %93, %95, %cst_90 {dimension_numbers = #tpu.dot_dimension_numbers<[1], [0], [0], [1], [0, 0, 1, 1], [], []>} : vector<64x128xbf16>, vector<128x128xbf16>, vector<64x128xf32> -> vector<64x128xf32>
    %97 = arith.addf %92, %96 : vector<64x128xf32>
    %c0_91 = arith.constant 0 : index
    %c0_92 = arith.constant 0 : index
    %98 = vector.load %arg10[%c0_91, %c0_92] : memref<64x128xf32, #tpu.memory_space<vmem>>, vector<64x128xf32>
    tpu.vector_store %arg10[%c0_91, %c0_92], %97 {strides = array<i32>} : memref<64x128xf32, #tpu.memory_space<vmem>>, vector<64x128xf32>,
    %c1_93 = arith.constant 1 : index
    %c0_94 = arith.constant 0 : index
    %c0_95 = arith.constant 0 : index
    %c0_96 = arith.constant 0 : index
    %99 = vector.load %arg9[%c1_93, %c0_94, %c0_95, %c0_96] : memref<4x9x9x128xbf16, #tpu.memory_space<vmem>>, vector<1x8x8x128xbf16>
    %100 = vector.shape_cast %99 : vector<1x8x8x128xbf16> to vector<8x8x128xbf16>
    %c0_97 = arith.constant 0 : index
    %c0_98 = arith.constant 0 : index
    %101 = vector.load %arg10[%c0_97, %c0_98] : memref<64x128xf32, #tpu.memory_space<vmem>>, vector<64x128xf32>
    %102 = vector.shape_cast %100 : vector<8x8x128xbf16> to vector<64x128xbf16>
    %c1_99 = arith.constant 1 : index
    %c0_100 = arith.constant 0 : index
    %c0_101 = arith.constant 0 : index
    %103 = vector.load %arg5[%c1_99, %c0_100, %c0_101] : memref<9x128x128xbf16, #tpu.memory_space<vmem>>, vector<1x128x128xbf16>
    %104 = vector.shape_cast %103 : vector<1x128x128xbf16> to vector<128x128xbf16>
    %cst_102 = arith.constant dense<0.000000e+00> : vector<64x128xf32>
    %105 = tpu.matmul %102, %104, %cst_102 {dimension_numbers = #tpu.dot_dimension_numbers<[1], [0], [0], [1], [0, 0, 1, 1], [], []>} : vector<64x128xbf16>, vector<128x128xbf16>, vector<64x128xf32> -> vector<64x128xf32>
    %106 = arith.addf %101, %105 : vector<64x128xf32>
    %c0_103 = arith.constant 0 : index
    %c0_104 = arith.constant 0 : index
    %107 = vector.load %arg10[%c0_103, %c0_104] : memref<64x128xf32, #tpu.memory_space<vmem>>, vector<64x128xf32>
    tpu.vector_store %arg10[%c0_103, %c0_104], %106 {strides = array<i32>} : memref<64x128xf32, #tpu.memory_space<vmem>>, vector<64x128xf32>,
    %c0_105 = arith.constant 0 : index
    %c0_106 = arith.constant 0 : index
    %c1_107 = arith.constant 1 : index
    %c0_108 = arith.constant 0 : index
    %108 = vector.load %arg9[%c0_105, %c0_106, %c1_107, %c0_108] : memref<4x9x9x128xbf16, #tpu.memory_space<vmem>>, vector<1x8x8x128xbf16>
    %109 = vector.shape_cast %108 : vector<1x8x8x128xbf16> to vector<8x8x128xbf16>
    %c0_109 = arith.constant 0 : index
    %c0_110 = arith.constant 0 : index
    %110 = vector.load %arg10[%c0_109, %c0_110] : memref<64x128xf32, #tpu.memory_space<vmem>>, vector<64x128xf32>
    %111 = vector.shape_cast %109 : vector<8x8x128xbf16> to vector<64x128xbf16>
    %c2_111 = arith.constant 2 : index
    %c0_112 = arith.constant 0 : index
    %c0_113 = arith.constant 0 : index
    %112 = vector.load %arg5[%c2_111, %c0_112, %c0_113] : memref<9x128x128xbf16, #tpu.memory_space<vmem>>, vector<1x128x128xbf16>
    %113 = vector.shape_cast %112 : vector<1x128x128xbf16> to vector<128x128xbf16>
    %cst_114 = arith.constant dense<0.000000e+00> : vector<64x128xf32>
    %114 = tpu.matmul %111, %113, %cst_114 {dimension_numbers = #tpu.dot_dimension_numbers<[1], [0], [0], [1], [0, 0, 1, 1], [], []>} : vector<64x128xbf16>, vector<128x128xbf16>, vector<64x128xf32> -> vector<64x128xf32>
    %115 = arith.addf %110, %114 : vector<64x128xf32>
    %c0_115 = arith.constant 0 : index
    %c0_116 = arith.constant 0 : index
    %116 = vector.load %arg10[%c0_115, %c0_116] : memref<64x128xf32, #tpu.memory_space<vmem>>, vector<64x128xf32>
    tpu.vector_store %arg10[%c0_115, %c0_116], %115 {strides = array<i32>} : memref<64x128xf32, #tpu.memory_space<vmem>>, vector<64x128xf32>,
    %c2_117 = arith.constant 2 : index
    %c0_118 = arith.constant 0 : index
    %c0_119 = arith.constant 0 : index
    %c0_120 = arith.constant 0 : index
    %117 = vector.load %arg9[%c2_117, %c0_118, %c0_119, %c0_120] : memref<4x9x9x128xbf16, #tpu.memory_space<vmem>>, vector<1x8x8x128xbf16>
    %118 = vector.shape_cast %117 : vector<1x8x8x128xbf16> to vector<8x8x128xbf16>
    %c0_121 = arith.constant 0 : index
    %c0_122 = arith.constant 0 : index
    %119 = vector.load %arg10[%c0_121, %c0_122] : memref<64x128xf32, #tpu.memory_space<vmem>>, vector<64x128xf32>
    %120 = vector.shape_cast %118 : vector<8x8x128xbf16> to vector<64x128xbf16>
    %c3_123 = arith.constant 3 : index
    %c0_124 = arith.constant 0 : index
    %c0_125 = arith.constant 0 : index
    %121 = vector.load %arg5[%c3_123, %c0_124, %c0_125] : memref<9x128x128xbf16, #tpu.memory_space<vmem>>, vector<1x128x128xbf16>
    %122 = vector.shape_cast %121 : vector<1x128x128xbf16> to vector<128x128xbf16>
    %cst_126 = arith.constant dense<0.000000e+00> : vector<64x128xf32>
    %123 = tpu.matmul %120, %122, %cst_126 {dimension_numbers = #tpu.dot_dimension_numbers<[1], [0], [0], [1], [0, 0, 1, 1], [], []>} : vector<64x128xbf16>, vector<128x128xbf16>, vector<64x128xf32> -> vector<64x128xf32>
    %124 = arith.addf %119, %123 : vector<64x128xf32>
    %c0_127 = arith.constant 0 : index
    %c0_128 = arith.constant 0 : index
    %125 = vector.load %arg10[%c0_127, %c0_128] : memref<64x128xf32, #tpu.memory_space<vmem>>, vector<64x128xf32>
    tpu.vector_store %arg10[%c0_127, %c0_128], %124 {strides = array<i32>} : memref<64x128xf32, #tpu.memory_space<vmem>>, vector<64x128xf32>,
    %c3_129 = arith.constant 3 : index
    %c0_130 = arith.constant 0 : index
    %c0_131 = arith.constant 0 : index
    %c0_132 = arith.constant 0 : index
    %126 = vector.load %arg9[%c3_129, %c0_130, %c0_131, %c0_132] : memref<4x9x9x128xbf16, #tpu.memory_space<vmem>>, vector<1x8x8x128xbf16>
    %127 = vector.shape_cast %126 : vector<1x8x8x128xbf16> to vector<8x8x128xbf16>
    %c0_133 = arith.constant 0 : index
    %c0_134 = arith.constant 0 : index
    %128 = vector.load %arg10[%c0_133, %c0_134] : memref<64x128xf32, #tpu.memory_space<vmem>>, vector<64x128xf32>
    %129 = vector.shape_cast %127 : vector<8x8x128xbf16> to vector<64x128xbf16>
    %c4 = arith.constant 4 : index
    %c0_135 = arith.constant 0 : index
    %c0_136 = arith.constant 0 : index
    %130 = vector.load %arg5[%c4, %c0_135, %c0_136] : memref<9x128x128xbf16, #tpu.memory_space<vmem>>, vector<1x128x128xbf16>
    %131 = vector.shape_cast %130 : vector<1x128x128xbf16> to vector<128x128xbf16>
    %cst_137 = arith.constant dense<0.000000e+00> : vector<64x128xf32>
    %132 = tpu.matmul %129, %131, %cst_137 {dimension_numbers = #tpu.dot_dimension_numbers<[1], [0], [0], [1], [0, 0, 1, 1], [], []>} : vector<64x128xbf16>, vector<128x128xbf16>, vector<64x128xf32> -> vector<64x128xf32>
    %133 = arith.addf %128, %132 : vector<64x128xf32>
    %c0_138 = arith.constant 0 : index
    %c0_139 = arith.constant 0 : index
    %134 = vector.load %arg10[%c0_138, %c0_139] : memref<64x128xf32, #tpu.memory_space<vmem>>, vector<64x128xf32>
    tpu.vector_store %arg10[%c0_138, %c0_139], %133 {strides = array<i32>} : memref<64x128xf32, #tpu.memory_space<vmem>>, vector<64x128xf32>,
    %c2_140 = arith.constant 2 : index
    %c0_141 = arith.constant 0 : index
    %c1_142 = arith.constant 1 : index
    %c0_143 = arith.constant 0 : index
    %135 = vector.load %arg9[%c2_140, %c0_141, %c1_142, %c0_143] : memref<4x9x9x128xbf16, #tpu.memory_space<vmem>>, vector<1x8x8x128xbf16>
    %136 = vector.shape_cast %135 : vector<1x8x8x128xbf16> to vector<8x8x128xbf16>
    %c0_144 = arith.constant 0 : index
    %c0_145 = arith.constant 0 : index
    %137 = vector.load %arg10[%c0_144, %c0_145] : memref<64x128xf32, #tpu.memory_space<vmem>>, vector<64x128xf32>
    %138 = vector.shape_cast %136 : vector<8x8x128xbf16> to vector<64x128xbf16>
    %c5 = arith.constant 5 : index
    %c0_146 = arith.constant 0 : index
    %c0_147 = arith.constant 0 : index
    %139 = vector.load %arg5[%c5, %c0_146, %c0_147] : memref<9x128x128xbf16, #tpu.memory_space<vmem>>, vector<1x128x128xbf16>
    %140 = vector.shape_cast %139 : vector<1x128x128xbf16> to vector<128x128xbf16>
    %cst_148 = arith.constant dense<0.000000e+00> : vector<64x128xf32>
    %141 = tpu.matmul %138, %140, %cst_148 {dimension_numbers = #tpu.dot_dimension_numbers<[1], [0], [0], [1], [0, 0, 1, 1], [], []>} : vector<64x128xbf16>, vector<128x128xbf16>, vector<64x128xf32> -> vector<64x128xf32>
    %142 = arith.addf %137, %141 : vector<64x128xf32>
    %c0_149 = arith.constant 0 : index
    %c0_150 = arith.constant 0 : index
    %143 = vector.load %arg10[%c0_149, %c0_150] : memref<64x128xf32, #tpu.memory_space<vmem>>, vector<64x128xf32>
    tpu.vector_store %arg10[%c0_149, %c0_150], %142 {strides = array<i32>} : memref<64x128xf32, #tpu.memory_space<vmem>>, vector<64x128xf32>,
    %c0_151 = arith.constant 0 : index
    %c1_152 = arith.constant 1 : index
    %c0_153 = arith.constant 0 : index
    %c0_154 = arith.constant 0 : index
    %144 = vector.load %arg9[%c0_151, %c1_152, %c0_153, %c0_154] : memref<4x9x9x128xbf16, #tpu.memory_space<vmem>>, vector<1x8x8x128xbf16>
    %145 = vector.shape_cast %144 : vector<1x8x8x128xbf16> to vector<8x8x128xbf16>
    %c0_155 = arith.constant 0 : index
    %c0_156 = arith.constant 0 : index
    %146 = vector.load %arg10[%c0_155, %c0_156] : memref<64x128xf32, #tpu.memory_space<vmem>>, vector<64x128xf32>
    %147 = vector.shape_cast %145 : vector<8x8x128xbf16> to vector<64x128xbf16>
    %c6 = arith.constant 6 : index
    %c0_157 = arith.constant 0 : index
    %c0_158 = arith.constant 0 : index
    %148 = vector.load %arg5[%c6, %c0_157, %c0_158] : memref<9x128x128xbf16, #tpu.memory_space<vmem>>, vector<1x128x128xbf16>
    %149 = vector.shape_cast %148 : vector<1x128x128xbf16> to vector<128x128xbf16>
    %cst_159 = arith.constant dense<0.000000e+00> : vector<64x128xf32>
    %150 = tpu.matmul %147, %149, %cst_159 {dimension_numbers = #tpu.dot_dimension_numbers<[1], [0], [0], [1], [0, 0, 1, 1], [], []>} : vector<64x128xbf16>, vector<128x128xbf16>, vector<64x128xf32> -> vector<64x128xf32>
    %151 = arith.addf %146, %150 : vector<64x128xf32>
    %c0_160 = arith.constant 0 : index
    %c0_161 = arith.constant 0 : index
    %152 = vector.load %arg10[%c0_160, %c0_161] : memref<64x128xf32, #tpu.memory_space<vmem>>, vector<64x128xf32>
    tpu.vector_store %arg10[%c0_160, %c0_161], %151 {strides = array<i32>} : memref<64x128xf32, #tpu.memory_space<vmem>>, vector<64x128xf32>,
    %c1_162 = arith.constant 1 : index
    %c1_163 = arith.constant 1 : index
    %c0_164 = arith.constant 0 : index
    %c0_165 = arith.constant 0 : index
    %153 = vector.load %arg9[%c1_162, %c1_163, %c0_164, %c0_165] : memref<4x9x9x128xbf16, #tpu.memory_space<vmem>>, vector<1x8x8x128xbf16>
    %154 = vector.shape_cast %153 : vector<1x8x8x128xbf16> to vector<8x8x128xbf16>
    %c0_166 = arith.constant 0 : index
    %c0_167 = arith.constant 0 : index
    %155 = vector.load %arg10[%c0_166, %c0_167] : memref<64x128xf32, #tpu.memory_space<vmem>>, vector<64x128xf32>
    %156 = vector.shape_cast %154 : vector<8x8x128xbf16> to vector<64x128xbf16>
    %c7 = arith.constant 7 : index
    %c0_168 = arith.constant 0 : index
    %c0_169 = arith.constant 0 : index
    %157 = vector.load %arg5[%c7, %c0_168, %c0_169] : memref<9x128x128xbf16, #tpu.memory_space<vmem>>, vector<1x128x128xbf16>
    %158 = vector.shape_cast %157 : vector<1x128x128xbf16> to vector<128x128xbf16>
    %cst_170 = arith.constant dense<0.000000e+00> : vector<64x128xf32>
    %159 = tpu.matmul %156, %158, %cst_170 {dimension_numbers = #tpu.dot_dimension_numbers<[1], [0], [0], [1], [0, 0, 1, 1], [], []>} : vector<64x128xbf16>, vector<128x128xbf16>, vector<64x128xf32> -> vector<64x128xf32>
    %160 = arith.addf %155, %159 : vector<64x128xf32>
    %c0_171 = arith.constant 0 : index
    %c0_172 = arith.constant 0 : index
    %161 = vector.load %arg10[%c0_171, %c0_172] : memref<64x128xf32, #tpu.memory_space<vmem>>, vector<64x128xf32>
    tpu.vector_store %arg10[%c0_171, %c0_172], %160 {strides = array<i32>} : memref<64x128xf32, #tpu.memory_space<vmem>>, vector<64x128xf32>,
    %c0_173 = arith.constant 0 : index
    %c1_174 = arith.constant 1 : index
    %c1_175 = arith.constant 1 : index
    %c0_176 = arith.constant 0 : index
    %162 = vector.load %arg9[%c0_173, %c1_174, %c1_175, %c0_176] : memref<4x9x9x128xbf16, #tpu.memory_space<vmem>>, vector<1x8x8x128xbf16>
    %163 = vector.shape_cast %162 : vector<1x8x8x128xbf16> to vector<8x8x128xbf16>
    %c0_177 = arith.constant 0 : index
    %c0_178 = arith.constant 0 : index
    %164 = vector.load %arg10[%c0_177, %c0_178] : memref<64x128xf32, #tpu.memory_space<vmem>>, vector<64x128xf32>
    %165 = vector.shape_cast %163 : vector<8x8x128xbf16> to vector<64x128xbf16>
    %c8_179 = arith.constant 8 : index
    %c0_180 = arith.constant 0 : index
    %c0_181 = arith.constant 0 : index
    %166 = vector.load %arg5[%c8_179, %c0_180, %c0_181] : memref<9x128x128xbf16, #tpu.memory_space<vmem>>, vector<1x128x128xbf16>
    %167 = vector.shape_cast %166 : vector<1x128x128xbf16> to vector<128x128xbf16>
    %cst_182 = arith.constant dense<0.000000e+00> : vector<64x128xf32>
    %168 = tpu.matmul %165, %167, %cst_182 {dimension_numbers = #tpu.dot_dimension_numbers<[1], [0], [0], [1], [0, 0, 1, 1], [], []>} : vector<64x128xbf16>, vector<128x128xbf16>, vector<64x128xf32> -> vector<64x128xf32>
    %169 = arith.addf %164, %168 : vector<64x128xf32>
    %c0_183 = arith.constant 0 : index
    %c0_184 = arith.constant 0 : index
    %170 = vector.load %arg10[%c0_183, %c0_184] : memref<64x128xf32, #tpu.memory_space<vmem>>, vector<64x128xf32>
    tpu.vector_store %arg10[%c0_183, %c0_184], %169 {strides = array<i32>} : memref<64x128xf32, #tpu.memory_space<vmem>>, vector<64x128xf32>,
    %c0_185 = arith.constant 0 : index
    %c0_186 = arith.constant 0 : index
    %171 = vector.load %arg10[%c0_185, %c0_186] : memref<64x128xf32, #tpu.memory_space<vmem>>, vector<64x128xf32>
    %c0_187 = arith.constant 0 : index
    %c0_188 = arith.constant 0 : index
    %172 = vector.load %arg6[%c0_187, %c0_188] : memref<1x128xf32, #tpu.memory_space<vmem>>, vector<1x128xf32>
    %173 = vector.broadcast %172 : vector<1x128xf32> to vector<64x128xf32>
    %174 = arith.mulf %171, %173 : vector<64x128xf32>
    %c0_189 = arith.constant 0 : index
    %c0_190 = arith.constant 0 : index
    %175 = vector.load %arg7[%c0_189, %c0_190] : memref<1x128xf32, #tpu.memory_space<vmem>>, vector<1x128xf32>
    %176 = vector.broadcast %175 : vector<1x128xf32> to vector<64x128xf32>
    %177 = arith.addf %174, %176 : vector<64x128xf32>
    %cst_191 = arith.constant 0.000000e+00 : f32
    %178 = vector.broadcast %cst_191 : f32 to vector<64x128xf32>
    %179 = arith.maximumf %177, %178 : vector<64x128xf32>
    %180 = vector.shape_cast %179 : vector<64x128xf32> to vector<8x8x128xf32>
    %181 = arith.truncf %180 : vector<8x8x128xf32> to vector<8x8x128xbf16>
    %c0_192 = arith.constant 0 : index
    %c1_193 = arith.constant 1 : index
    %c1_194 = arith.constant 1 : index
    %c0_195 = arith.constant 0 : index
    %182 = vector.load %arg8[%c0_192, %c1_193, %c1_194, %c0_195] : memref<1x10x10x128xbf16, #tpu.memory_space<vmem>>, vector<1x8x8x128xbf16>
    %183 = vector.shape_cast %182 : vector<1x8x8x128xbf16> to vector<8x8x128xbf16>
    %184 = vector.shape_cast %181 : vector<8x8x128xbf16> to vector<1x8x8x128xbf16>
    tpu.vector_store %arg8[%c0_192, %c1_193, %c1_194, %c0_195], %184 {strides = array<i32>} : memref<1x10x10x128xbf16, #tpu.memory_space<vmem>>, vector<1x8x8x128xbf16>,
    %cst_196 = arith.constant 0.000000e+00 : bf16
    %185 = vector.broadcast %cst_196 : bf16 to vector<1x10x128xbf16>
    %c0_197 = arith.constant 0 : index
    %c0_198 = arith.constant 0 : index
    %c0_199 = arith.constant 0 : index
    %c0_200 = arith.constant 0 : index
    %186 = vector.load %arg8[%c0_197, %c0_198, %c0_199, %c0_200] : memref<1x10x10x128xbf16, #tpu.memory_space<vmem>>, vector<1x1x10x128xbf16>
    %187 = vector.shape_cast %186 : vector<1x1x10x128xbf16> to vector<1x10x128xbf16>
    %188 = vector.shape_cast %185 : vector<1x10x128xbf16> to vector<1x1x10x128xbf16>
    tpu.vector_store %arg8[%c0_197, %c0_198, %c0_199, %c0_200], %188 {strides = array<i32>} : memref<1x10x10x128xbf16, #tpu.memory_space<vmem>>, vector<1x1x10x128xbf16>,
    %cst_201 = arith.constant 0.000000e+00 : bf16
    %189 = vector.broadcast %cst_201 : bf16 to vector<1x10x128xbf16>
    %c0_202 = arith.constant 0 : index
    %c9 = arith.constant 9 : index
    %c0_203 = arith.constant 0 : index
    %c0_204 = arith.constant 0 : index
    %190 = vector.load %arg8[%c0_202, %c9, %c0_203, %c0_204] : memref<1x10x10x128xbf16, #tpu.memory_space<vmem>>, vector<1x1x10x128xbf16>
    %191 = vector.shape_cast %190 : vector<1x1x10x128xbf16> to vector<1x10x128xbf16>
    %192 = vector.shape_cast %189 : vector<1x10x128xbf16> to vector<1x1x10x128xbf16>
    tpu.vector_store %arg8[%c0_202, %c9, %c0_203, %c0_204], %192 {strides = array<i32>} : memref<1x10x10x128xbf16, #tpu.memory_space<vmem>>, vector<1x1x10x128xbf16>,
    %cst_205 = arith.constant 0.000000e+00 : bf16
    %193 = vector.broadcast %cst_205 : bf16 to vector<8x1x128xbf16>
    %c0_206 = arith.constant 0 : index
    %c1_207 = arith.constant 1 : index
    %c0_208 = arith.constant 0 : index
    %c0_209 = arith.constant 0 : index
    %194 = vector.load %arg8[%c0_206, %c1_207, %c0_208, %c0_209] : memref<1x10x10x128xbf16, #tpu.memory_space<vmem>>, vector<1x8x1x128xbf16>
    %195 = vector.shape_cast %194 : vector<1x8x1x128xbf16> to vector<8x1x128xbf16>
    %196 = vector.shape_cast %193 : vector<8x1x128xbf16> to vector<1x8x1x128xbf16>
    tpu.vector_store %arg8[%c0_206, %c1_207, %c0_208, %c0_209], %196 {strides = array<i32>} : memref<1x10x10x128xbf16, #tpu.memory_space<vmem>>, vector<1x8x1x128xbf16>,
    %cst_210 = arith.constant 0.000000e+00 : bf16
    %197 = vector.broadcast %cst_210 : bf16 to vector<8x1x128xbf16>
    %c0_211 = arith.constant 0 : index
    %c1_212 = arith.constant 1 : index
    %c9_213 = arith.constant 9 : index
    %c0_214 = arith.constant 0 : index
    %198 = vector.load %arg8[%c0_211, %c1_212, %c9_213, %c0_214] : memref<1x10x10x128xbf16, #tpu.memory_space<vmem>>, vector<1x8x1x128xbf16>
    %199 = vector.shape_cast %198 : vector<1x8x1x128xbf16> to vector<8x1x128xbf16>
    %200 = vector.shape_cast %197 : vector<8x1x128xbf16> to vector<1x8x1x128xbf16>
    tpu.vector_store %arg8[%c0_211, %c1_212, %c9_213, %c0_214], %200 {strides = array<i32>} : memref<1x10x10x128xbf16, #tpu.memory_space<vmem>>, vector<1x8x1x128xbf16>,
    return
  }
  func.func @transform_0(%arg0: i32, %arg1: i32) -> (i32, i32, i32, i32, i32) {
    %c0_i32 = arith.constant 0 : i32
    %c0_i32_0 = arith.constant 0 : i32
    %c0_i32_1 = arith.constant 0 : i32
    %c0_i32_2 = arith.constant 0 : i32
    %c0_i32_3 = arith.constant 0 : i32
    return %arg1, %c0_i32, %c0_i32_0, %c0_i32_1, %c0_i32_2 : i32, i32, i32, i32, i32
  }
  func.func @transform_1(%arg0: i32, %arg1: i32) -> (i32, i32) {
    %c0_i32 = arith.constant 0 : i32
    %c0_i32_0 = arith.constant 0 : i32
    %c0_i32_1 = arith.constant 0 : i32
    return %c0_i32, %c0_i32_0 : i32, i32
  }
  func.func @transform_2(%arg0: i32, %arg1: i32) -> (i32, i32) {
    %c0_i32 = arith.constant 0 : i32
    %c0_i32_0 = arith.constant 0 : i32
    %c0_i32_1 = arith.constant 0 : i32
    return %c0_i32, %c0_i32_0 : i32, i32
  }
  func.func @transform_3(%arg0: i32, %arg1: i32) -> (i32, i32, i32) {
    %c0_i32 = arith.constant 0 : i32
    %c0_i32_0 = arith.constant 0 : i32
    %c0_i32_1 = arith.constant 0 : i32
    return %c0_i32, %c0_i32_0, %arg0 : i32, i32, i32
  }
  func.func @transform_4(%arg0: i32, %arg1: i32) -> (i32, i32) {
    %c0_i32 = arith.constant 0 : i32
    %c0_i32_0 = arith.constant 0 : i32
    return %c0_i32, %arg0 : i32, i32
  }
  func.func @transform_5(%arg0: i32, %arg1: i32) -> (i32, i32) {
    %c0_i32 = arith.constant 0 : i32
    %c0_i32_0 = arith.constant 0 : i32
    return %c0_i32, %arg0 : i32, i32
  }
  func.func @transform_6(%arg0: i32, %arg1: i32) -> (i32, i32, i32, i32) {
    %c0_i32 = arith.constant 0 : i32
    %c0_i32_0 = arith.constant 0 : i32
    %c0_i32_1 = arith.constant 0 : i32
    return %arg1, %c0_i32, %c0_i32_0, %arg0 : i32, i32, i32, i32
  }
}

</mosaic_0001>

<bundles_post_ra>
// kernel: tpu_custom_call.1
= control target key start
LH: loop header
LB: loop body
LE: loop exit
PB: predicated region body
PF: predicated region fallthrough
CT: control target
= control target key end

     0   :  { %s4392_s21 = smov 0   ;;  %s4394_s22 = smov 0   ;;  %s5245_s0 = inlined_call_operand.vmem [shape: bf16[2,4,9,9,128], index: 0, kind: input, shape index: {}]   ;;  %s5246_s1 = inlined_call_operand.vmem [shape: f32[1,128], index: 1, kind: input, shape index: {}]   ;;  %s5247_s2 = inlined_call_operand.vmem [shape: f32[1,128], index: 2, kind: input, shape index: {}]   ;;  %s5248_s3 = inlined_call_operand.vmem [shape: bf16[9,128,128], index: 3, kind: input, shape index: {}]   ;;  %s5249_s4 = inlined_call_operand.vmem [shape: f32[1,128], index: 4, kind: input, shape index: {}]   ;;  %s5250_s5 = inlined_call_operand.vmem [shape: f32[1,128], index: 5, kind: input, shape index: {}]   ;;  %s5251_s6 = inlined_call_operand.vmem [shape: bf16[2,10,10,128], index: 6, kind: output, shape index: {}]  }
   0x1   :  { %s4396_s23 = smov 0  }
   0x2 LB: > { %s25_s24 = sadd.s32 1, %s4350_s22  ;;  %p3362_p0 = scmp.ge.s32.totalorder %s4354_s23, 1  ;;  %s4354_s23 = sphi %s4396_s23, %s16_s23   ;;  %s4350_s22 = sphi %s4394_s22, %s5261_s22   ;;  %s4346_s21 = sphi %s4392_s21, %s5260_s21  }
   0x3   : > { %p26_p1 = scmp.ge.s32.totalorder %s25_s24, 2  ;;  %p251_p2 = scmp.lt.s32.totalorder %s4354_s23, 3 }
   0x5   : > { %s5263_s24 = smov (%p26_p1, %s25_s24), 0  ;;  %p252_p3 = pnand %p3362_p0, %p251_p2 }
   0x6   : > { %v4232_v0 = vld [vmem:[%s5248_s3 + $0x100] sm:$0xff] (!%p252_p3)   ;;  %p294_p4 = scmp.lt.s32.totalorder (!%p252_p3), %s4346_s21, 1  ;;  %v4234_v2 = vld [vmem:[%s5248_s3 + $0x108] sm:$0xff] (!%p252_p3)   ;;  %v4236_v4 = vld [vmem:[%s5248_s3 + $0x110] sm:$0xff] (!%p252_p3)   ;;  %v4356_v7 = vmov (!%p252_p3), 0   ;;  %vm478_vm0 = vcmask (!%p252_p3), 1043456  }
   0x7   : > { %255 = sbr.rel (%p252_p3) target bundleno = 463 (0x1cf), region = 44  ;;  %4005 = vmatprep.subr.bf16.mxu0 (!%p252_p3), %v4232_v0  ;;  %v4233_v1 = vld [vmem:[%s5248_s3] sm:$0xff] (!%p252_p3)   ;;  %v4235_v3 = vld [vmem:[%s5248_s3 + $0x8] sm:$0xff] (!%p252_p3)   ;;  %v4237_v5 = vld [vmem:[%s5248_s3 + $0x10] sm:$0xff] (!%p252_p3)   ;;  %532 = vst [vmem:[#allocation2] sm:$0xf] (!%p252_p3), %v4356_v7 }
   0x8   : > { %4006 = vmatpush3.bf16.msra.mxu0 (!%p252_p3), %v4232_v0  ;;  %3909 = vmatprep.subr.bf16.mxu1 (!%p252_p3), %v4233_v1  ;;  %v4238_v6 = vld [vmem:[%s5248_s3 + $0x118] sm:$0xff] (!%p252_p3)   ;;  %619 = vst [vmem:[#allocation2 + $0x48] sm:$0xf] (!%p252_p3), %v4356_v7  ;;  %v4240_v9 = vld [vmem:[%s5248_s3 + $0x120] sm:$0xff] (!%p252_p3)   ;;  %v4242_v11 = vld [vmem:[%s5248_s3 + $0x128] sm:$0xff] (!%p252_p3)   ;;  %vm484_vm1 = vcmask (!%p252_p3), 1040384  }
   0x9   : > { %3910 = vmatpush3.bf16.msra.mxu1 (!%p252_p3), %v4233_v1  ;;  %4007 = vmatprep.subr.bf16.mxu0 (!%p252_p3), %v4234_v2  ;;  %v4239_v8 = vld [vmem:[%s5248_s3 + $0x18] sm:$0xff] (!%p252_p3)   ;;  %v4241_v10 = vld [vmem:[%s5248_s3 + $0x20] sm:$0xff] (!%p252_p3)   ;;  %v4464_v12 = vld [vmem:[%s5248_s3 + $0x28] sm:$0xff] (!%p252_p3)   ;;  %vm479_vm2 = vsmask.f32 (!%p252_p3), 7938 }
   0xa   : > { %3911 = vmatprep.subr.bf16.mxu1 (!%p252_p3), %v4235_v3  ;;  %v620_v13 = vld [vmem:[#allocation2 + $0x4c] sm:$0x1] (!%p252_p3)  ;;  %v623_v14 = vld [vmem:[#allocation2 + $0x54] sm:$0x1] (!%p252_p3)  ;;  %v626_v17 = vld [vmem:[#allocation2 + $0x5c] sm:$0x1] (!%p252_p3) }
   0xb   : > { %v4469_v15 = vld [vmem:[%s5248_s3 + $0x130] sm:$0xff] (!%p252_p3)   ;;  %v4475_v18 = vld [vmem:[%s5246_s1] ss:$0 sm:$0xff] (!%p252_p3)  ;;  %v629_v23 = vld [vmem:[#allocation2 + $0x64] sm:$0x1] (!%p252_p3) }
   0xc   : > { %4008 = vmatpush3.bf16.msra.mxu0 (!%p252_p3), %v4234_v2  ;;  %v632_v24 = vld [vmem:[#allocation2 + $0x6c] sm:$0x1] (!%p252_p3)  ;;  %v4484_v25 = vld [vmem:[%s5247_s2] ss:$0 sm:$0xff] (!%p252_p3)  ;;  %v635_v29 = vld [vmem:[#allocation2 + $0x74] sm:$0x1] (!%p252_p3) }
   0xd   : > { %4009 = vmatprep.subr.bf16.mxu0 (!%p252_p3), %v4236_v4  ;;  %3912 = vmatpush3.bf16.msra.mxu1 (!%p252_p3), %v4235_v3  ;;  %vm485_vm3 = vsmask.f32 (!%p252_p3), 256  ;;  %v638_v32 = vld [vmem:[#allocation2 + $0x7c] sm:$0x1] (!%p252_p3)  ;;  %v641_v33 = vld [vmem:[#allocation2 + $0x84] sm:$0x1] (!%p252_p3)  ;;  %vm4532_vm5 = vmand (!%p252_p3), %vm478_vm0, %vm479_vm2 }
   0xe   : > { %s5265_s21 = smov (!%p294_p4, %s4346_s21), 1  ;;  %3913 = vmatprep.subr.bf16.mxu1 %v4237_v5  ;;  %vm4493_vm4 = vmand %vm484_vm1, %vm485_vm3  ;;  %v644_v39 = vld [vmem:[#allocation2 + $0x8c] sm:$0x1]  ;;  %v4245_v40 = vld [vmem:[%s5248_s3 + $0x30] sm:$0xff]   ;;  %vm1360_vm6 = vsmask.f32 3328 }
   0xf   : > { %s4206_s11 = smul.u32 80, %s5265_s21  ;;  %v621_v43 = vsel %vm4493_vm4, 0, %v620_v13  ;;  %v624_v44 = vsel %vm4493_vm4, 0, %v623_v14  ;;  %v843_v45 = vld [vmem:[#allocation2 + $0xd4] sm:$0x1]  ;;  %v4246_v49 = vld [vmem:[%s5248_s3 + $0x138] sm:$0xff]   ;;  %vm5146_vm9 = vmand %vm484_vm1, %vm479_vm2 }
  0x10   : > { %4010 = vmatpush3.bf16.msra.mxu0 %v4236_v4  ;;  %s4205_s27 = smul.u32 288, %s5265_s21  ;;  %v930_v46 = vld [vmem:[#allocation2 + $0x11c] sm:$0x1]  ;;  %v936_v48 = vld [vmem:[#allocation2 + $0xe4] sm:$0x1]  ;;  %v627_v53 = vsel %vm4493_vm4, 0, %v626_v17 }
  0x11   : > { %s4437_s18 = scalar_lea.vmem %s5251_s6, %s4206_s11  ;;  %4011 = vmatprep.subr.bf16.mxu0 %v4238_v6  ;;  %3914 = vmatpush3.bf16.msra.mxu1 %v4237_v5  ;;  %v933_v47 = vld [vmem:[#allocation2 + $0xdc] sm:$0x1]  ;;  %622 = vst [vmem:[#allocation2 + $0x4c] sm:$0x1] %v621_v43  ;;  %625 = vst [vmem:[#allocation2 + $0x54] sm:$0x1] %v624_v44 }
  0x12   : > { %3184 = vst [vmem:[%s4437_s18] sm:$0xf] %v4356_v7  ;;  %3185 = vst [vmem:[%s4437_s18 + $0x4] sm:$0x1] %v4356_v7  ;;  %3915 = vmatprep.subr.bf16.mxu1 %v4239_v8  ;;  %s4459_s10 = scalar_lea.vmem %s5245_s0, %s4205_s27  ;;  %v939_v54 = vld [vmem:[#allocation2 + $0xec] sm:$0x1]  ;;  %v4520_v57 = vld [vmem:[%s5248_s3 + $0x38] sm:$0xff]  }
  0x13   : > { %3725 = vst [vmem:[%s4437_s18 + $0x48] sm:$0xf] %v4356_v7  ;;  %3726 = vst [vmem:[%s4437_s18 + $0x4c] sm:$0x1] %v4356_v7  ;;  %v3439_v16 = vld [vmem:[%s4459_s10 + $0xd8] ss:$8 sps:$4 sm:$0xff]  }
  0x14   : > { %4012 = vmatpush3.bf16.msra.mxu0 %v4238_v6  ;;  %v879_v19 = vunpack.c.l.bf16 %v3439_v16  ;;  %v880_v20 = vunpack.c.h.bf16 %v3439_v16  ;;  %v3441_v21 = vld [vmem:[%s4459_s10 + $0xe8] ss:$8 sps:$4 sm:$0xff]   ;;  %v942_v55 = vld [vmem:[#allocation2 + $0xf4] sm:$0x1]  ;;  %v945_v56 = vld [vmem:[#allocation2 + $0xfc] sm:$0x1] }
  0x15   : > { %4013 = vmatprep.subr.bf16.mxu0 %v4240_v9  ;;  %3916 = vmatpush3.bf16.msra.mxu1 %v4239_v8  ;;  %v4479_v22 = vld [vmem:[%s4459_s10 + $0x8] ss:$8 sps:$4 sm:$0xff]   ;;  %v881_v26 = vunpack.c.l.bf16 %v3441_v21  ;;  %v882_v27 = vunpack.c.h.bf16 %v3441_v21  ;;  %628 = vst [vmem:[#allocation2 + $0x5c] sm:$0x1] %v627_v53  ;;  %v630_v61 = vsel %vm4493_vm4, 0, %v629_v23  ;;  %v633_v62 = vsel %vm4493_vm4, 0, %v632_v24 }
  0x16   : > { %3917 = vmatprep.subr.bf16.mxu1 %v4241_v10  ;;  %v337_v28 = vunpack.c.l.bf16 %v4479_v22  ;;  %v887_v30 = vmul.f32 %v4475_v18, %v879_v19  ;;  %v888_v31 = vmul.f32 %v4475_v18, %v880_v20  ;;  %v339_v38 = vunpack.c.h.bf16 %v4479_v22  ;;  %v481_v60 = vld [vmem:[#allocation2 + $0x8] sm:$0xf]  ;;  %v948_v63 = vld [vmem:[#allocation2 + $0x104] sm:$0x1]  ;;  %v951_v0 = vld [vmem:[#allocation2 + $0x10c] sm:$0x1] }
  0x17   : > { %v889_v34 = vmul.f32 %v4475_v18, %v881_v26  ;;  %v890_v35 = vmul.f32 %v4475_v18, %v882_v27  ;;  %v954_v1 = vld [vmem:[#allocation2 + $0x114] sm:$0x1]  ;;  %631 = vst [vmem:[#allocation2 + $0x64] sm:$0x1] %v630_v61  ;;  %634 = vst [vmem:[#allocation2 + $0x6c] sm:$0x1] %v633_v62 }
  0x18   : > { %4014 = vmatpush3.bf16.msra.mxu0 %v4240_v9  ;;  %v359_v36 = vmul.f32 %v4475_v18, %v337_v28  ;;  %v895_v41 = vadd.f32 %v4484_v25, %v887_v30  ;;  %v896_v42 = vadd.f32 %v4484_v25, %v888_v31  ;;  %v636_v5 = vsel %vm4493_vm4, 0, %v635_v29  ;;  %v4572_v31 = vld [vmem:[%s5248_s3 + $0x40] sm:$0xff]   ;;  %v4254_v22 = vld [vmem:[%s5248_s3 + $0x148] sm:$0xff]   ;;  %v490_v43 = vld [vmem:[#allocation2 + $0x10] sm:$0xf] }
  0x19   : > { %4015 = vmatprep.subr.bf16.mxu0 %v4242_v11  ;;  %3918 = vmatpush3.bf16.msra.mxu1 %v4241_v10  ;;  %v897_v50 = vadd.f32 %v4484_v25, %v889_v34  ;;  %v898_v51 = vadd.f32 %v4484_v25, %v890_v35  ;;  %637 = vst [vmem:[#allocation2 + $0x74] sm:$0x1] %v636_v5  ;;  %v639_v9 = vsel %vm4493_vm4, 0, %v638_v32  ;;  %v642_v10 = vsel %vm4493_vm4, 0, %v641_v33 }
  0x1a   : > { %3919 = vmatprep.subr.bf16.mxu1 %v4464_v12  ;;  %v381_v52 = vadd.f32 %v4484_v25, %v359_v36  ;;  %v903_v58 = vmax.f32 %v895_v41, 0.0  ;;  %v904_v59 = vmax.f32 %v896_v42, 0.0  ;;  %640 = vst [vmem:[#allocation2 + $0x7c] sm:$0x1] %v639_v9  ;;  %643 = vst [vmem:[#allocation2 + $0x84] sm:$0x1] %v642_v10  ;;  %v361_v33 = vmul.f32 %v4475_v18, %v339_v38 }
  0x1b   : > { %v905_v2 = vmax.f32 %v897_v50, 0.0  ;;  %v906_v3 = vmax.f32 %v898_v51, 0.0  ;;  %v645_v16 = vsel %vm4493_vm4, 0, %v644_v39  ;;  %v844_v17 = vsel %vm4493_vm4, 0, %v843_v45 }
  0x1c   : > { %4016 = vmatpush3.bf16.msra.mxu0 %v4242_v11  ;;  %v397_v4 = vmax.f32 %v381_v52, 0.0  ;;  %v911_v6 = vpack.c.bf16 %v903_v58, %v903_v58  ;;  %v912_v7 = vpack.c.bf16 %v904_v59, %v904_v59  ;;  %v3369_v11 = vld [vmem:[%s4459_s10 + $0x18] ss:$232 sps:$4 sm:$0xff]   ;;  %646 = vst [vmem:[#allocation2 + $0x8c] sm:$0x1] %v645_v16  ;;  %v931_v19 = vsel %vm4493_vm4, 0, %v930_v46 }
  0x1d   : > { %4017 = vmatprep.subr.bf16.mxu0 %v4469_v15  ;;  %3920 = vmatpush3.bf16.msra.mxu1 %v4464_v12  ;;  %v4249_v12 = vld [vmem:[%s5248_s3 + $0x140] sm:$0xff]   ;;  %v913_v13 = vpack.c.bf16 %v905_v2, %v905_v2  ;;  %v914_v14 = vpack.c.bf16 %v906_v3, %v906_v3  ;;  %v934_v20 = vsel %vm4493_vm4, 0, %v933_v47  ;;  %v937_v21 = vsel %vm4493_vm4, 0, %v936_v48  ;;  %845 = vst [vmem:[#allocation2 + $0xd4] sm:$0x1] %v844_v17 }
  0x1e   : > { %3921 = vmatprep.subr.bf16.mxu1 %v4245_v40  ;;  %920 = vst [vmem:[#allocation2 + $0xd8] sm:$0xf] %v911_v6  ;;  %921 = vst [vmem:[#allocation2 + $0xe0] sm:$0xf] %v912_v7  ;;  %v940_v24 = vsel %vm4493_vm4, 0, %v939_v54  ;;  %v943_v26 = vsel %vm4493_vm4, 0, %v942_v55  ;;  %v341_v32 = vunpack.c.l.bf16 %v3369_v11  ;;  %v884_v34 = vunpack.c.h.bf16 %v3369_v11 }
  0x1f   : > { %922 = vst [vmem:[#allocation2 + $0xe8] sm:$0xf] %v913_v13  ;;  %923 = vst [vmem:[#allocation2 + $0xf0] sm:$0xf] %v914_v14  ;;  %v946_v27 = vsel %vm4493_vm4, 0, %v945_v56  ;;  %v949_v28 = vsel %vm4493_vm4, 0, %v948_v63  ;;  %v383_v36 = vadd.f32 %v4484_v25, %v361_v33 }
  0x20   : > { %4018 = vmatpush3.bf16.msra.mxu0 %v4469_v15  ;;  %v3761_v15 = vpack.c.bf16 %v397_v4, %v397_v4  ;;  %932 = vst [vmem:[#allocation2 + $0x11c] sm:$0x1] %v931_v19  ;;  %935 = vst [vmem:[#allocation2 + $0xdc] sm:$0x1] %v934_v20  ;;  %v952_v29 = vsel %vm4493_vm4, 0, %v951_v0  ;;  %v955_v30 = vsel %vm4493_vm4, 0, %v954_v1  ;;  %v363_v35 = vmul.f32 %v4475_v18, %v341_v32 }
  0x21   : > { %4019 = vmatprep.subr.bf16.mxu0 %v4246_v49  ;;  %3922 = vmatpush3.bf16.msra.mxu1 %v4245_v40  ;;  %938 = vst [vmem:[#allocation2 + $0xe4] sm:$0x1] %v937_v21  ;;  %941 = vst [vmem:[#allocation2 + $0xec] sm:$0x1] %v940_v24  ;;  %v892_v39 = vmul.f32 %v4475_v18, %v884_v34  ;;  %v399_v45 = vmax.f32 %v383_v36, 0.0  ;;  %v4256_v56 = vld [vmem:[%s5248_s3 + $0x150] sm:$0xff]  }
  0x22   : > { %v482_v23 = vsel %vm4532_vm5, %v3761_v15, %v481_v60  ;;  %3923 = vmatprep.subr.bf16.mxu1 %v4520_v57  ;;  %944 = vst [vmem:[#allocation2 + $0xf4] sm:$0x1] %v943_v26  ;;  %947 = vst [vmem:[#allocation2 + $0xfc] sm:$0x1] %v946_v27  ;;  %v385_v40 = vadd.f32 %v4484_v25, %v363_v35  ;;  %v496_v48 = vld [vmem:[#allocation2 + $0x18] sm:$0xf] }
  0x23   : > { %483 = vst [vmem:[#allocation2 + $0x8] sm:$0xf] %v482_v23  ;;  %950 = vst [vmem:[#allocation2 + $0x104] sm:$0x1] %v949_v28  ;;  %v900_v38 = vadd.f32 %v4484_v25, %v892_v39  ;;  %v3763_v51 = vpack.c.bf16 %v399_v45, %v399_v45  ;;  %v3446_v54 = vld [vmem:[%s4459_s10 + $0x20] ss:$240 sps:$4 sm:$0xff]  }
  0x24   : > { %4020 = vmatpush3.bf16.msra.mxu0 %v4246_v49  ;;  %953 = vst [vmem:[#allocation2 + $0x10c] sm:$0x1] %v952_v29  ;;  %956 = vst [vmem:[#allocation2 + $0x114] sm:$0x1] %v955_v30  ;;  %v401_v46 = vmax.f32 %v385_v40, 0.0  ;;  %v886_v58 = vunpack.c.h.bf16 %v3446_v54  ;;  %v343_v60 = vunpack.c.l.bf16 %v3446_v54  ;;  %v4258_v11 = vld [vmem:[%s5248_s3 + $0x158] sm:$0xff]  }
  0x25   : > { %4029 = vmatprep.subr.bf16.mxu0 %v4249_v12  ;;  %3924 = vmatpush3.bf16.msra.mxu1 %v4520_v57  ;;  %v4248_v41 = vld [vmem:[#allocation2 + $0xd8] ss:$8 sps:$4 sm:$0xff]   ;;  %v908_v50 = vmax.f32 %v900_v38, 0.0  ;;  %v3373_v59 = vld [vmem:[%s4459_s10 + $0x28] ss:$8 sps:$4 sm:$0xff]   ;;  %v491_v61 = vsel %vm4532_vm5, %v3763_v51, %v490_v43 }
  0x26   : > { %3933 = vmatprep.subr.bf16.mxu1 %v4572_v31  ;;  %v4250_v42 = vld [vmem:[#allocation2 + $0xe8] ss:$8 sps:$4 sm:$0xff]   ;;  %4021 = vmatprep.mubr.bf16.mxu0 %v4248_v41  ;;  %v3765_v52 = vpack.c.bf16 %v401_v46, %v401_v46  ;;  %492 = vst [vmem:[#allocation2 + $0x10] sm:$0xf] %v491_v61  ;;  %v894_v1 = vmul.f32 %v4475_v18, %v886_v58  ;;  %v345_v2 = vunpack.c.l.bf16 %v3373_v59  ;;  %v347_v5 = vunpack.c.h.bf16 %v3373_v59  ;;  %v3408_v20 = vld [vmem:[%s4459_s10 + $0x94] sm:$0x1] }
  0x27   : > { %4022 = vmatmul.mubr.bf16.vlgmr.msra.gmra.mrb[0].mxu0 %v4250_v42  ;;  %v3443_v49 = vld [vmem:[%s4459_s10 + $0xf8] ss:$16 sps:$4 sm:$0xff]   ;;  %v916_v57 = vpack.c.bf16 %v908_v50, %v908_v50  ;;  %v365_v3 = vmul.f32 %v4475_v18, %v343_v60  ;;  %v4260_v30 = vld [vmem:[%s5248_s3 + $0x160] sm:$0xff]   ;;  %v3410_v36 = vld [vmem:[%s4459_s10 + $0x9c] sm:$0x1]  ;;  %v665_v39 = vunpack.c.l.bf16 %v3408_v20 }
  0x28   : > { %4030 = vmatpush3.bf16.msra.mxu0 %v4249_v12  ;;  %v883_v53 = vunpack.c.l.bf16 %v3443_v49  ;;  %v885_v55 = vunpack.c.h.bf16 %v3443_v49  ;;  %v497_v62 = vsel %vm4532_vm5, %v3765_v52, %v496_v48  ;;  %v3377_v4 = vld [vmem:[%s4459_s10 + $0x38] ss:$88 sps:$4 sm:$0xff]   ;;  %v902_v12 = vadd.f32 %v4484_v25, %v894_v1  ;;  %v502_v34 = vld [vmem:[#allocation2 + $0x20] sm:$0xf]  ;;  %v508_v38 = vld [vmem:[#allocation2 + $0x28] sm:$0xf] }
  0x29   : > { %4031 = vmatprep.subr.bf16.mxu0 %v4254_v22  ;;  %498 = vst [vmem:[#allocation2 + $0x18] sm:$0xf] %v497_v62  ;;  %925 = vst [vmem:[#allocation2 + $0x100] sm:$0xf] %v916_v57  ;;  %v349_v9 = vunpack.c.l.bf16 %v3377_v4  ;;  %v664_v10 = vunpack.c.h.bf16 %v3377_v4  ;;  %v367_v13 = vmul.f32 %v4475_v18, %v345_v2  ;;  %v387_v14 = vadd.f32 %v4484_v25, %v365_v3  ;;  %v4616_v21 = vld [vmem:[%s4459_s10 + $0x98] ss:$8 sps:$4 sm:$0xff]  }
  0x2a   : > { %v536_v44 = vld [vmem:[#allocation2 + $0x8] sm:$0x1]  ;;  %v891_v63 = vmul.f32 %v4475_v18, %v883_v53  ;;  %v893_v0 = vmul.f32 %v4475_v18, %v885_v55  ;;  %v369_v15 = vmul.f32 %v4475_v18, %v347_v5  ;;  %v910_v26 = vmax.f32 %v902_v12, 0.0  ;;  %v514_v43 = vld [vmem:[#allocation2 + $0x30] sm:$0xf] }
  0x2b   : > { %v537_v47 = vsel %vm4493_vm4, 0, %v536_v44  ;;  %v371_v19 = vmul.f32 %v4475_v18, %v349_v9  ;;  %v680_v23 = vmul.f32 %v4475_v18, %v664_v10  ;;  %v389_v27 = vadd.f32 %v4484_v25, %v367_v13  ;;  %v3412_v58 = vld [vmem:[%s4459_s10 + $0xa4] sm:$0x1]  ;;  %v4262_v59 = vld [vmem:[%s5248_s3 + $0x168] sm:$0xff]   ;;  %v520_v61 = vld [vmem:[#allocation2 + $0x38] sm:$0xf] }
  0x2c   : > { %538 = vst [vmem:[#allocation2 + $0x8] sm:$0x1] %v537_v47  ;;  %4032 = vmatpush3.bf16.msra.mxu0 %v4254_v22  ;;  %v899_v6 = vadd.f32 %v4484_v25, %v891_v63  ;;  %v901_v7 = vadd.f32 %v4484_v25, %v893_v0  ;;  %v403_v28 = vmax.f32 %v387_v14, 0.0  ;;  %v391_v29 = vadd.f32 %v4484_v25, %v369_v15  ;;  %v4645_v0 = vld [vmem:[%s4459_s10 + $0x50] ss:$88 sps:$4 sm:$0xff]  }
  0x2d   : > { %4033 = vmatprep.subr.bf16.mxu0 %v4256_v56  ;;  %v393_v35 = vadd.f32 %v4484_v25, %v371_v19  ;;  %v918_v40 = vpack.c.bf16 %v910_v26, %v910_v26  ;;  %v405_v22 = vmax.f32 %v389_v27, 0.0  ;;  %v539_v44 = vld [vmem:[#allocation2 + $0x10] sm:$0x1]  ;;  %v666_v46 = vunpack.c.l.bf16 %v4616_v21  ;;  %v799_v12 = vld [vmem:[#allocation2 + $0x98] sm:$0xf] }
  0x2e   : > { %v907_v16 = vmax.f32 %v899_v6, 0.0  ;;  %v909_v17 = vmax.f32 %v901_v7, 0.0  ;;  %v3767_v41 = vpack.c.bf16 %v403_v28, %v403_v28  ;;  %v407_v42 = vmax.f32 %v391_v29, 0.0  ;;  %v793_v5 = vld [vmem:[#allocation2 + $0x90] sm:$0xf] }
  0x2f   : > { %v667_v47 = vunpack.c.l.bf16 %v3410_v36  ;;  %v681_v48 = vmul.f32 %v4475_v18, %v665_v39  ;;  %v696_v49 = vadd.f32 %v4484_v25, %v680_v23  ;;  %v540_v50 = vsel %vm4493_vm4, 0, %v539_v44  ;;  %927 = vst [vmem:[#allocation2 + $0x110] sm:$0xf] %v918_v40  ;;  %v796_v6 = vld [vmem:[#allocation2 + $0x94] sm:$0x1]  ;;  %v4664_v23 = vld [vmem:[%s5248_s3 + $0x48] sm:$0xff]  }
  0x30   : > { %4034 = vmatpush3.bf16.msra.mxu0 %v4256_v56  ;;  %v915_v32 = vpack.c.bf16 %v907_v16, %v907_v16  ;;  %v917_v33 = vpack.c.bf16 %v909_v17, %v909_v17  ;;  %v542_v45 = vld [vmem:[#allocation2 + $0x18] sm:$0x1]  ;;  %v3769_v52 = vpack.c.bf16 %v405_v22, %v405_v22  ;;  %v503_v53 = vsel %vm4532_vm5, %v3767_v41, %v502_v34  ;;  %v3414_v7 = vld [vmem:[%s4459_s10 + $0xac] sm:$0x1]  ;;  %v4655_v9 = vld [vmem:[%s5248_s3 + $0x170] sm:$0xff]  }
  0x31   : > { %4035 = vmatprep.subr.bf16.mxu0 %v4258_v11  ;;  %v543_v51 = vsel %vm4493_vm4, 0, %v542_v45  ;;  %541 = vst [vmem:[#allocation2 + $0x10] sm:$0x1] %v540_v50  ;;  %504 = vst [vmem:[#allocation2 + $0x20] sm:$0xf] %v503_v53  ;;  %v409_v54 = vmax.f32 %v393_v35, 0.0  ;;  %v3771_v55 = vpack.c.bf16 %v407_v42, %v407_v42  ;;  %v682_v56 = vmul.f32 %v4475_v18, %v666_v46 }
  0x32   : > { %924 = vst [vmem:[#allocation2 + $0xf8] sm:$0xf] %v915_v32  ;;  %926 = vst [vmem:[#allocation2 + $0x108] sm:$0xf] %v917_v33  ;;  %v683_v57 = vmul.f32 %v4475_v18, %v667_v47  ;;  %v509_v60 = vsel %vm4532_vm5, %v3769_v52, %v508_v38  ;;  %v697_v62 = vadd.f32 %v4484_v25, %v681_v48  ;;  %v712_v63 = vmax.f32 %v696_v49, 0.0  ;;  %v4674_v36 = vld [vmem:[%s5248_s3 + $0x178] sm:$0xff]  }
  0x33   : > { %v4251_v24 = vld [vmem:[#allocation2] ss:$8 sps:$4 sm:$0xff]   ;;  %544 = vst [vmem:[#allocation2 + $0x18] sm:$0x1] %v543_v51  ;;  %510 = vst [vmem:[#allocation2 + $0x28] sm:$0xf] %v509_v60  ;;  %v3773_v1 = vpack.c.bf16 %v409_v54, %v409_v54  ;;  %v515_v2 = vsel %vm4532_vm5, %v3771_v55, %v514_v43  ;;  %v698_v3 = vadd.f32 %v4484_v25, %v682_v56  ;;  %v668_v14 = vunpack.c.h.bf16 %v4616_v21 }
  0x34   : > { %3925 = vmatprep.mubr.bf16.mxu1 %v4251_v24  ;;  %4036 = vmatpush3.bf16.msra.mxu0 %v4258_v11  ;;  %v699_v4 = vadd.f32 %v4484_v25, %v683_v57  ;;  %516 = vst [vmem:[#allocation2 + $0x30] sm:$0xf] %v515_v2  ;;  %v713_v10 = vmax.f32 %v697_v62, 0.0  ;;  %v3777_v11 = vpack.c.bf16 %v712_v63, %v712_v63  ;;  %v802_v13 = vld [vmem:[#allocation2 + $0x9c] sm:$0x1]  ;;  %v669_v15 = vunpack.c.l.bf16 %v3412_v58  ;;  %v4257_v55 = vld [vmem:[%s5248_s3 + $0x50] sm:$0xff]  }
  0x35   : > { %4037 = vmatprep.subr.bf16.mxu0 %v4260_v30  ;;  %v521_v16 = vsel %vm4532_vm5, %v3773_v1, %v520_v61  ;;  %v714_v17 = vmax.f32 %v698_v3, 0.0  ;;  %v670_v20 = vunpack.c.h.bf16 %v4645_v0  ;;  %v671_v27 = vunpack.c.l.bf16 %v3414_v7  ;;  %v805_v46 = vld [vmem:[#allocation2 + $0xa0] sm:$0xf]  ;;  %v808_v52 = vld [vmem:[#allocation2 + $0xa4] sm:$0x1] }
  0x36   : > { %v715_v19 = vmax.f32 %v699_v4, 0.0  ;;  %522 = vst [vmem:[#allocation2 + $0x38] sm:$0xf] %v521_v16  ;;  %v3778_v26 = vpack.c.bf16 %v713_v10, %v713_v10  ;;  %v794_v21 = vsel %vm4532_vm5, %v3777_v11, %v793_v5  ;;  %v684_v28 = vmul.f32 %v4475_v18, %v668_v14  ;;  %v3400_v47 = vld [vmem:[%s4459_s10 + $0x58] ss:$8 sps:$4 sm:$0xff]  }
  0x37   : > { %795 = vst [vmem:[#allocation2 + $0x90] sm:$0xf] %v794_v21  ;;  %v685_v33 = vmul.f32 %v4475_v18, %v669_v15  ;;  %v686_v34 = vmul.f32 %v4475_v18, %v670_v20  ;;  %v687_v40 = vmul.f32 %v4475_v18, %v671_v27  ;;  %v569_v41 = vunpack.c.l.bf16 %v4645_v0  ;;  %v811_v53 = vld [vmem:[#allocation2 + $0xa8] sm:$0xf]  ;;  %v814_v60 = vld [vmem:[#allocation2 + $0xac] sm:$0x1] }
  0x38   : > { %4038 = vmatpush3.bf16.msra.mxu0 %v4260_v30  ;;  %v3779_v30 = vpack.c.bf16 %v714_v17, %v714_v17  ;;  %v3780_v32 = vpack.c.bf16 %v715_v19, %v715_v19  ;;  %v797_v39 = vsel %vm4493_vm4, %v3778_v26, %v796_v6  ;;  %v700_v22 = vadd.f32 %v4484_v25, %v684_v28  ;;  %v545_v38 = vld [vmem:[#allocation2 + $0x20] sm:$0x1]  ;;  %v4259_v17 = vld [vmem:[%s5248_s3 + $0x58] sm:$0xff]  }
  0x39   : > { %4039 = vmatprep.subr.bf16.mxu0 %v4262_v59  ;;  %v4264_v24 = vld [vmem:[#allocation2 + $0xf8] ss:$8 sps:$4 sm:$0xff]   ;;  %v4266_v29 = vld [vmem:[#allocation2 + $0x108] ss:$8 sps:$4 sm:$0xff]   ;;  %798 = vst [vmem:[#allocation2 + $0x94] sm:$0x1] %v797_v39  ;;  %v701_v44 = vadd.f32 %v4484_v25, %v685_v33  ;;  %v702_v45 = vadd.f32 %v4484_v25, %v686_v34  ;;  %v703_v50 = vadd.f32 %v4484_v25, %v687_v40  ;;  %v570_v61 = vunpack.c.l.bf16 %v3400_v47 }
  0x3a   : > { %v4253_v35 = vld [vmem:[#allocation2 + $0x10] ss:$8 sps:$4 sm:$0xff]   ;;  %4025 = vmatprep.mubr.bf16.mxu0 %v4264_v24  ;;  %v800_v42 = vsel %vm4532_vm5, %v3779_v30, %v799_v12  ;;  %v803_v43 = vsel %vm4493_vm4, %v3780_v32, %v802_v13  ;;  %v546_v48 = vsel %vm4493_vm4, 0, %v545_v38  ;;  %v548_v49 = vld [vmem:[#allocation2 + $0x28] sm:$0x1]  ;;  %v716_v51 = vmax.f32 %v700_v22, 0.0 }
  0x3b   : > { %3926 = vmatmul.mubr.bf16.vlgmr.msra.gmra.mrb[0].mxu1 %v4253_v35  ;;  %801 = vst [vmem:[#allocation2 + $0x98] sm:$0xf] %v800_v42  ;;  %804 = vst [vmem:[#allocation2 + $0x9c] sm:$0x1] %v803_v43  ;;  %v577_v54 = vmul.f32 %v4475_v18, %v569_v41  ;;  %4026 = vmatmul.mubr.bf16.gmra.mrb[4].mxu0 %v4266_v29  ;;  %v549_v56 = vsel %vm4493_vm4, 0, %v548_v49  ;;  %v717_v58 = vmax.f32 %v701_v44, 0.0  ;;  %v571_v4 = vunpack.c.h.bf16 %v3400_v47 }
  0x3c   : > { %4040 = vmatpush3.bf16.msra.mxu0 %v4262_v59  ;;  %3934 = vmatpush3.bf16.msra.mxu1 %v4572_v31  ;;  %547 = vst [vmem:[#allocation2 + $0x20] sm:$0x1] %v546_v48  ;;  %v551_v57 = vld [vmem:[#allocation2 + $0x30] sm:$0x1]  ;;  %v718_v59 = vmax.f32 %v702_v45, 0.0  ;;  %v719_v62 = vmax.f32 %v703_v50, 0.0  ;;  %v3781_v63 = vpack.c.bf16 %v716_v51, %v716_v51  ;;  %v578_v5 = vmul.f32 %v4475_v18, %v570_v61 }
  0x3d   : > { %4041 = vmatprep.subr.bf16.mxu0 %v4655_v9  ;;  %3935 = vmatprep.subr.bf16.mxu1 %v4664_v23  ;;  %550 = vst [vmem:[#allocation2 + $0x28] sm:$0x1] %v549_v56  ;;  %v552_v31 = vsel %vm4493_vm4, 0, %v551_v57  ;;  %v585_v0 = vadd.f32 %v4484_v25, %v577_v54  ;;  %v554_v1 = vld [vmem:[#allocation2 + $0x38] sm:$0x1]  ;;  %v3782_v2 = vpack.c.bf16 %v717_v58, %v717_v58  ;;  %v4711_v10 = vld [vmem:[%s5248_s3 + $0x180] sm:$0xff]  }
  0x3e   : > { %553 = vst [vmem:[#allocation2 + $0x30] sm:$0x1] %v552_v31  ;;  %v3783_v3 = vpack.c.bf16 %v718_v59, %v718_v59  ;;  %v555_v6 = vsel %vm4493_vm4, 0, %v554_v1  ;;  %v846_v7 = vld [vmem:[#allocation2 + $0x90] sm:$0x1]  ;;  %v3784_v11 = vpack.c.bf16 %v719_v62, %v719_v62  ;;  %v579_v16 = vmul.f32 %v4475_v18, %v571_v4  ;;  %v4261_v28 = vld [vmem:[%s5248_s3 + $0x60] sm:$0xff]  }
  0x3f   : > { %v593_v12 = vmax.f32 %v585_v0, 0.0  ;;  %556 = vst [vmem:[#allocation2 + $0x38] sm:$0x1] %v555_v6  ;;  %v847_v13 = vsel %vm4493_vm4, 0, %v846_v7  ;;  %v809_v14 = vsel %vm4493_vm4, %v3782_v2, %v808_v52  ;;  %v4263_v40 = vld [vmem:[%s5248_s3 + $0x68] sm:$0xff]   ;;  %v4268_v57 = vld [vmem:[%s5248_s3 + $0x70] sm:$0xff]  }
  0x40   : > { %4042 = vmatpush3.bf16.msra.mxu0 %v4655_v9  ;;  %v806_v9 = vsel %vm4532_vm5, %v3781_v63, %v805_v46  ;;  %3936 = vmatpush3.bf16.msra.mxu1 %v4664_v23  ;;  %v812_v15 = vsel %vm4532_vm5, %v3783_v3, %v811_v53  ;;  %848 = vst [vmem:[#allocation2 + $0x90] sm:$0x1] %v847_v13  ;;  %810 = vst [vmem:[#allocation2 + $0xa4] sm:$0x1] %v809_v14  ;;  %v2010_v30 = vld [vmem:[#allocation2 + $0x94] sm:$0x1] }
  0x41   : > { %4043 = vmatprep.subr.bf16.mxu0 %v4674_v36  ;;  %807 = vst [vmem:[#allocation2 + $0xa0] sm:$0xf] %v806_v9  ;;  %3937 = vmatprep.subr.bf16.mxu1 %v4257_v55  ;;  %813 = vst [vmem:[#allocation2 + $0xa8] sm:$0xf] %v812_v15  ;;  %v815_v19 = vsel %vm4493_vm4, %v3784_v11, %v814_v60  ;;  %v601_v20 = vpack.c.bf16 %v593_v12, %v593_v12  ;;  %v2043_v44 = vshll.u32 %v2010_v30, 16  ;;  %v4271_v31 = vld [vmem:[%s5248_s3 + $0x78] sm:$0xff]  }
  0x42   : > { %v586_v23 = vadd.f32 %v4484_v25, %v578_v5  ;;  %v849_v24 = vld [vmem:[#allocation2 + $0x98] sm:$0x1]  ;;  %816 = vst [vmem:[#allocation2 + $0xac] sm:$0x1] %v815_v19  ;;  %v587_v26 = vadd.f32 %v4484_v25, %v579_v16  ;;  %v2012_v33 = vld [vmem:[#allocation2 + $0x9c] sm:$0x1] }
  0x43   : > { %v850_v21 = vsel %vm4493_vm4, 0, %v849_v24  ;;  %610 = vst [vmem:[#allocation2 + $0x50] sm:$0xf] %v601_v20  ;;  %v2057_v47 = vshll.u32 %v2012_v33, 16  ;;  %vm1361_vm7 = vsmask.f32 7440 }
  0x44   : > { %4044 = vmatpush3.bf16.msra.mxu0 %v4674_v36  ;;  %v594_v27 = vmax.f32 %v586_v23, 0.0  ;;  %3938 = vmatpush3.bf16.msra.mxu1 %v4257_v55  ;;  %v4267_v29 = vld [vmem:[#allocation2 + $0x20] ss:$8 sps:$4 sm:$0xff]   ;;  %851 = vst [vmem:[#allocation2 + $0x98] sm:$0x1] %v850_v21  ;;  %v595_v32 = vmax.f32 %v587_v26, 0.0  ;;  %vm4751_vm8 = vmor %vm1360_vm6, %vm1361_vm7 }
  0x45   : > { %4053 = vmatprep.subr.bf16.mxu0 %v4711_v10  ;;  %3939 = vmatprep.subr.bf16.mxu1 %v4259_v17  ;;  %v2045_v59 = vrot.slane %v2043_v44, 5  ;;  %v2059_v0 = vrot.slane %v2057_v47, 5  ;;  %v3415_v14 = vld [vmem:[%s4459_s10 + $0xb0] ss:$8 sps:$4 sm:$0xff]   ;;  %v3418_v19 = vld [vmem:[%s4459_s10 + $0xbc] sm:$0x1] }
  0x46   : > { %v602_v34 = vpack.c.bf16 %v594_v27, %v594_v27  ;;  %3929 = vmatprep.mubr.bf16.mxu1 %v4267_v29  ;;  %v603_v35 = vpack.c.bf16 %v595_v32, %v595_v32  ;;  %v4269_v36 = vld [vmem:[#allocation2 + $0x30] ss:$8 sps:$4 sm:$0xff]   ;;  %v672_v20 = vunpack.c.l.bf16 %v3415_v14  ;;  %v674_v23 = vunpack.c.h.bf16 %v3415_v14  ;;  %v4274_v30 = vld [vmem:[%s5248_s3 + $0x80] sm:$0xff]   ;;  %v3422_v44 = vld [vmem:[%s4459_s10 + $0xcc] sm:$0x1] }
  0x47   : > { %v2009_v22 = vld [vmem:[#allocation2 + $0x90] sm:$0xf]  ;;  %3930 = vmatmul.mubr.bf16.gmra.mrb[4].mxu1 %v4269_v36  ;;  %v2014_v46 = vld [vmem:[#allocation2 + $0xa4] sm:$0x1]  ;;  %v675_v32 = vunpack.c.l.bf16 %v3418_v19 }
  0x48   : > { %v852_v39 = vld [vmem:[#allocation2 + $0xa0] sm:$0x1]  ;;  %611 = vst [vmem:[#allocation2 + $0x58] sm:$0xf] %v602_v34  ;;  %3940 = vmatpush3.bf16.msra.mxu1 %v4259_v17  ;;  %v855_v38 = vld [vmem:[#allocation2 + $0xa8] sm:$0x1]  ;;  %v688_v33 = vmul.f32 %v4475_v18, %v672_v20  ;;  %v690_v36 = vmul.f32 %v4475_v18, %v674_v23 }
  0x49   : > { %v853_v41 = vsel %vm4493_vm4, 0, %v852_v39  ;;  %612 = vst [vmem:[#allocation2 + $0x60] sm:$0xf] %v603_v35  ;;  %3941 = vmatprep.subr.bf16.mxu1 %v4261_v28  ;;  %v2034_v42 = vshrl.u32 %v2009_v22, 16  ;;  %v2037_v43 = vshll.u32 %v2009_v22, 16  ;;  %v856_v45 = vsel %vm4493_vm4, 0, %v855_v38 }
  0x4a   : > { %854 = vst [vmem:[#allocation2 + $0xa0] sm:$0x1] %v853_v41  ;;  %857 = vst [vmem:[#allocation2 + $0xa8] sm:$0x1] %v856_v45  ;;  %v2016_v48 = vld [vmem:[#allocation2 + $0xac] sm:$0x1]  ;;  %v706_v47 = vadd.f32 %v4484_v25, %v690_v36 }
  0x4b   : > { %v2011_v49 = vld [vmem:[#allocation2 + $0x98] sm:$0xf]  ;;  %v2036_v50 = vrot.slane %v2034_v42, 4  ;;  %v2039_v51 = vrot.slane %v2037_v43, 5  ;;  %v2071_v52 = vshll.u32 %v2014_v46, 16  ;;  %v2085_v53 = vshll.u32 %v2016_v48, 16 }
  0x4c   : > { %3942 = vmatpush3.bf16.msra.mxu1 %v4261_v28  ;;  %v2048_v54 = vshrl.u32 %v2011_v49, 16  ;;  %v2051_v55 = vshll.u32 %v2011_v49, 16  ;;  %v4273_v56 = vld [vmem:[#allocation2 + $0x48] ss:$8 sps:$4 sm:$0xff]   ;;  %v3416_v17 = vld [vmem:[%s4459_s10 + $0xb4] sm:$0x1]  ;;  %v704_v43 = vadd.f32 %v4484_v25, %v688_v33 }
  0x4d   : > { %3943 = vmatprep.subr.bf16.mxu1 %v4263_v40  ;;  %v2040_v58 = vor.u32 %v2039_v51, %v2036_v50  ;;  %3949 = vmatprep.mubr.bf16.mxu1 %v4273_v56  ;;  %v4755_v1 = vrot.slane %v2071_v52, 5  ;;  %v4757_v2 = vrot.slane %v2085_v53, 5  ;;  %v673_v27 = vunpack.c.l.bf16 %v3416_v17  ;;  %v3419_v39 = vld [vmem:[%s4459_s10 + $0xc0] ss:$8 sps:$4 sm:$0xff]   ;;  %v817_v48 = vld [vmem:[#allocation2 + $0xb0] sm:$0xf] }
  0x4e   : > { %v2050_v60 = vrot.slane %v2048_v54, 4  ;;  %v2053_v61 = vrot.slane %v2051_v55, 5  ;;  %v4777_v38 = vld [vmem:[%s5246_s1] ss:$0 sm:$0xff]  ;;  %v676_v45 = vunpack.c.l.bf16 %v3419_v39  ;;  %v4276_v51 = vld [vmem:[%s5248_s3 + $0x188] sm:$0xff]   ;;  %v720_v54 = vmax.f32 %v704_v43, 0.0 }
  0x4f   : > { %v2041_v63 = vrot.slane %v2040_v58, 4  ;;  %v689_v35 = vmul.f32 %v4475_v18, %v673_v27  ;;  %v691_v42 = vmul.f32 %v4777_v38, %v675_v32  ;;  %v4277_v52 = vld [vmem:[%s5248_s3 + $0x88] sm:$0xff]   ;;  %v4796_v53 = vld [vmem:[%s5247_s2] ss:$0 sm:$0xff]  ;;  %v820_v55 = vld [vmem:[#allocation2 + $0xb4] sm:$0x1] }
  0x50   : > { %3944 = vmatpush3.bf16.msra.mxu1 %v4263_v40  ;;  %v2054_v3 = vor.u32 %v2053_v61, %v2050_v60  ;;  %v3420_v40 = vld [vmem:[%s4459_s10 + $0xc4] sm:$0x1]  ;;  %v4275_v41 = vld [vmem:[#allocation2 + $0x58] ss:$8 sps:$4 sm:$0xff]   ;;  %v3402_v58 = vld [vmem:[%s4459_s10 + $0x68] ss:$8 sps:$4 sm:$0xff]  }
  0x51   : > { %v2013_v4 = vld [vmem:[#allocation2 + $0xa0] sm:$0xf]  ;;  %3945 = vmatprep.subr.bf16.mxu1 %v4268_v57  ;;  %v2015_v5 = vld [vmem:[#allocation2 + $0xa8] sm:$0xf]  ;;  %v2046_v11 = vsel %vm4751_vm8, %v2041_v63, %v2045_v59  ;;  %v705_v18 = vadd.f32 %v4484_v25, %v689_v35  ;;  %v677_v49 = vunpack.c.l.bf16 %v3420_v40  ;;  %v707_v25 = vadd.f32 %v4796_v53, %v691_v42  ;;  %v823_v56 = vld [vmem:[#allocation2 + $0xb8] sm:$0xf] }
  0x52   : > { %v2062_v6 = vshrl.u32 %v2013_v4, 16  ;;  %v2065_v7 = vshll.u32 %v2013_v4, 16  ;;  %v2055_v9 = vrot.slane %v2054_v3, 4  ;;  %v2076_v12 = vshrl.u32 %v2015_v5, 16  ;;  %v826_v4 = vld [vmem:[#allocation2 + $0xbc] sm:$0x1] }
  0x53   : > { %v2079_v13 = vshll.u32 %v2015_v5, 16  ;;  %v721_v60 = vmax.f32 %v705_v18, 0.0  ;;  %v722_v61 = vmax.f32 %v706_v47, 0.0  ;;  %v3785_v3 = vpack.c.bf16 %v720_v54, %v720_v54  ;;  %v4278_v23 = vld [vmem:[%s5248_s3 + $0x190] sm:$0xff]   ;;  %v4281_v27 = vld [vmem:[%s5248_s3 + $0x98] sm:$0xff]  }
  0x54   : > { %v2064_v15 = vrot.slane %v2062_v6, 4  ;;  %v2067_v16 = vrot.slane %v2065_v7, 5  ;;  %3946 = vmatpush3.bf16.msra.mxu1 %v4268_v57  ;;  %v2060_v24 = vsel %vm4751_vm8, %v2055_v9, %v2059_v0  ;;  %v2078_v26 = vrot.slane %v2076_v12, 4  ;;  %v4279_v0 = vld [vmem:[%s5248_s3 + $0x90] sm:$0xff]   ;;  %v832_v36 = vld [vmem:[#allocation2 + $0xc4] sm:$0x1] }
  0x55   : > { %v2081_v21 = vrot.slane %v2079_v13, 5  ;;  %3947 = vmatprep.subr.bf16.mxu1 %v4271_v31  ;;  %v3587_v28 = vcombine.low %v2046_v11, %v2060_v24  ;;  %v678_v57 = vunpack.c.h.bf16 %v3419_v39  ;;  %v692_v5 = vmul.f32 %v4777_v38, %v676_v45  ;;  %v835_v39 = vld [vmem:[#allocation2 + $0xc8] sm:$0xf]  ;;  %v838_v43 = vld [vmem:[#allocation2 + $0xcc] sm:$0x1] }
  0x56   : > { %v2068_v29 = vor.u32 %v2067_v16, %v2064_v15  ;;  %v3786_v6 = vpack.c.bf16 %v721_v60, %v721_v60  ;;  %v3787_v7 = vpack.c.bf16 %v722_v61, %v722_v61  ;;  %v818_v12 = vsel %vm4532_vm5, %v3785_v3, %v817_v48  ;;  %v3404_v15 = vld [vmem:[%s4459_s10 + $0x78] ss:$8 sps:$4 sm:$0xff]  }
  0x57   : > { %v2082_v34 = vor.u32 %v2081_v21, %v2078_v26  ;;  %4045 = vmatprep.mubr.bf16.mxu0 %v3587_v28  ;;  %v694_v11 = vmul.f32 %v4777_v38, %v678_v57  ;;  %v572_v14 = vunpack.c.l.bf16 %v3402_v58  ;;  %819 = vst [vmem:[#allocation2 + $0xb0] sm:$0xf] %v818_v12  ;;  %v708_v19 = vadd.f32 %v4796_v53, %v692_v5  ;;  %v4283_v57 = vld [vmem:[%s5248_s3 + $0xa0] sm:$0xff]  }
  0x58   : > { %v2069_v22 = vrot.slane %v2068_v29, 4  ;;  %3948 = vmatpush3.bf16.msra.mxu1 %v4271_v31  ;;  %v679_v31 = vunpack.c.l.bf16 %v3422_v44  ;;  %v821_v16 = vsel %vm4493_vm4, %v3786_v6, %v820_v55  ;;  %v824_v17 = vsel %vm4532_vm5, %v3787_v7, %v823_v56  ;;  %v533_v55 = vld [vmem:[#allocation2 + $0x4] sm:$0x1]  ;;  %v1336_v56 = vld [vmem:[#allocation2] sm:$0xf] }
  0x59   : > { %v2083_v46 = vrot.slane %v2082_v34, 4  ;;  %3957 = vmatprep.subr.bf16.mxu1 %v4274_v30  ;;  %822 = vst [vmem:[#allocation2 + $0xb4] sm:$0x1] %v821_v16  ;;  %825 = vst [vmem:[#allocation2 + $0xb8] sm:$0xf] %v824_v17  ;;  %v710_v24 = vadd.f32 %v4796_v53, %v694_v11  ;;  %v573_v21 = vunpack.c.h.bf16 %v3402_v58  ;;  %v724_v28 = vmax.f32 %v708_v19, 0.0 }
  0x5a   : > { %v2074_v50 = vsel %vm4751_vm8, %v2069_v22, %v4755_v1  ;;  %v723_v1 = vmax.f32 %v707_v25, 0.0  ;;  %v695_v13 = vmul.f32 %v4777_v38, %v679_v31  ;;  %v580_v32 = vmul.f32 %v4777_v38, %v572_v14  ;;  %v3368_v7 = vld [vmem:[%s4459_s10 + $0x14] sm:$0x1] }
  0x5b   : > { %v2088_v59 = vsel %vm4751_vm8, %v2083_v46, %v4757_v2  ;;  %3950 = vmatmul.mubr.bf16.vlgmr.msra.gmra.mrb[0].mxu1 %v4275_v41  ;;  %v693_v2 = vmul.f32 %v4777_v38, %v677_v49  ;;  %v574_v33 = vunpack.c.l.bf16 %v3404_v15  ;;  %v726_v34 = vmax.f32 %v710_v24, 0.0  ;;  %v4280_v46 = vld [vmem:[%s5248_s3 + $0x198] sm:$0xff]  }
  0x5c   : > { %v3588_v63 = vcombine.low %v2074_v50, %v2088_v59  ;;  %3958 = vmatpush3.bf16.msra.mxu1 %v4274_v30  ;;  %v3788_v9 = vpack.c.bf16 %v723_v1, %v723_v1  ;;  %v711_v26 = vadd.f32 %v4796_v53, %v695_v13  ;;  %v829_v30 = vld [vmem:[#allocation2 + $0xc0] sm:$0xf]  ;;  %v581_v40 = vmul.f32 %v4777_v38, %v573_v21  ;;  %v3366_v50 = vld [vmem:[%s4459_s10 + $0xc] sm:$0x1] }
  0x5d   : > { %3959 = vmatprep.subr.bf16.mxu1 %v4277_v52  ;;  %v709_v20 = vadd.f32 %v4796_v53, %v693_v2  ;;  %v575_v22 = vunpack.c.h.bf16 %v3404_v15  ;;  %v3789_v41 = vpack.c.bf16 %v724_v28, %v724_v28  ;;  %v588_v44 = vadd.f32 %v4796_v53, %v580_v32  ;;  %v4282_v2 = vld [vmem:[%s5248_s3 + $0x1a0] sm:$0xff]   ;;  %v4864_v15 = vld [vmem:[%s4459_s10 + $0x1c] sm:$0x1] }
  0x5e   : > { %4046 = vmatmul.mubr.bf16.vlgmr.msra.gmra.mrb[0].mxu0 %v3588_v63  ;;  %v727_v35 = vmax.f32 %v711_v26, 0.0  ;;  %v582_v45 = vmul.f32 %v4777_v38, %v574_v33  ;;  %v3791_v18 = vpack.c.bf16 %v726_v34, %v726_v34  ;;  %v589_v48 = vadd.f32 %v4796_v53, %v581_v40  ;;  %v858_v58 = vld [vmem:[#allocation2 + $0xb0] sm:$0x1]  ;;  %v4853_v63 = vld [vmem:[#allocation2 + $0x8] sm:$0xf] }
  0x5f   : > { %4054 = vmatpush3.bf16.msra.mxu0 %v4711_v10  ;;  %v827_v10 = vsel %vm4493_vm4, %v3788_v9, %v826_v4  ;;  %v725_v29 = vmax.f32 %v709_v20, 0.0  ;;  %v583_v49 = vmul.f32 %v4777_v38, %v575_v22  ;;  %v596_v25 = vmax.f32 %v588_v44, 0.0  ;;  %v4885_v33 = vld [vmem:[%s5248_s3 + $0xb0] sm:$0xff]   ;;  %v487_v34 = vld [vmem:[#allocation2 + $0xc] sm:$0x1] }
  0x60   : > { %4055 = vmatprep.subr.bf16.mxu0 %v4276_v51  ;;  %3960 = vmatpush3.bf16.msra.mxu1 %v4277_v52  ;;  %828 = vst [vmem:[#allocation2 + $0xbc] sm:$0x1] %v827_v10  ;;  %v3792_v47 = vpack.c.bf16 %v727_v35, %v727_v35  ;;  %v590_v54 = vadd.f32 %v4796_v53, %v582_v45  ;;  %v597_v61 = vmax.f32 %v589_v48, 0.0  ;;  %v861_v1 = vld [vmem:[#allocation2 + $0xb8] sm:$0x1]  ;;  %v338_v6 = vunpack.c.l.bf16 %v3366_v50  ;;  %v4286_v50 = vld [vmem:[%s5248_s3 + $0x1b0] sm:$0xff]  }
  0x61   : > { %3961 = vmatprep.subr.bf16.mxu1 %v4279_v0  ;;  %v3790_v42 = vpack.c.bf16 %v725_v29, %v725_v29  ;;  %v836_v59 = vsel %vm4532_vm5, %v3791_v18, %v835_v39  ;;  %v591_v31 = vadd.f32 %v4796_v53, %v583_v49  ;;  %v2018_v3 = vld [vmem:[#allocation2 + $0xb4] sm:$0x1]  ;;  %v604_v4 = vpack.c.bf16 %v596_v25, %v596_v25 }
  0x62   : > { %v839_v60 = vsel %vm4493_vm4, %v3792_v47, %v838_v43  ;;  %837 = vst [vmem:[#allocation2 + $0xc8] sm:$0xf] %v836_v59  ;;  %v598_v5 = vmax.f32 %v590_v54, 0.0  ;;  %v862_v11 = vsel %vm4493_vm4, 0, %v861_v1  ;;  %v2099_v12 = vshll.u32 %v2018_v3, 16 }
  0x63   : > { %4056 = vmatpush3.bf16.msra.mxu0 %v4276_v51  ;;  %v830_v51 = vsel %vm4532_vm5, %v3789_v41, %v829_v30  ;;  %v833_v52 = vsel %vm4493_vm4, %v3790_v42, %v832_v36  ;;  %840 = vst [vmem:[#allocation2 + $0xcc] sm:$0x1] %v839_v60  ;;  %v605_v13 = vpack.c.bf16 %v597_v61, %v597_v61  ;;  %v599_v14 = vmax.f32 %v591_v31, 0.0  ;;  %v4909_v3 = vld [vmem:[#allocation2 + $0x18] sm:$0xf] }
  0x64   : > { %4057 = vmatprep.subr.bf16.mxu0 %v4278_v23  ;;  %3962 = vmatpush3.bf16.msra.mxu1 %v4279_v0  ;;  %831 = vst [vmem:[#allocation2 + $0xc0] sm:$0xf] %v830_v51  ;;  %834 = vst [vmem:[#allocation2 + $0xc4] sm:$0x1] %v833_v52  ;;  %v859_v0 = vsel %vm4493_vm4, 0, %v858_v58  ;;  %v606_v17 = vpack.c.bf16 %v598_v5, %v598_v5  ;;  %v360_v19 = vmul.f32 %v4777_v38, %v338_v6 }
  0x65   : > { %3963 = vmatprep.subr.bf16.mxu1 %v4281_v27  ;;  %860 = vst [vmem:[#allocation2 + $0xb0] sm:$0x1] %v859_v0  ;;  %863 = vst [vmem:[#allocation2 + $0xb8] sm:$0x1] %v862_v11  ;;  %v534_v20 = vsel %vm4493_vm4, 0, %v533_v55  ;;  %v4872_v10 = vrot.slane %v2099_v12, 5  ;;  %v607_v24 = vpack.c.bf16 %v599_v14, %v599_v14  ;;  %v340_v39 = vunpack.c.l.bf16 %v3368_v7 }
  0x66   : > { %613 = vst [vmem:[#allocation2 + $0x68] sm:$0xf] %v604_v4  ;;  %614 = vst [vmem:[#allocation2 + $0x70] sm:$0xf] %v605_v13  ;;  %v1364_v26 = vshrl.u32 %v1336_v56, 16  ;;  %v1367_v21 = vshll.u32 %v1336_v56, 16  ;;  %v382_v29 = vadd.f32 %v4796_v53, %v360_v19  ;;  %v342_v43 = vunpack.c.l.bf16 %v4864_v15 }
  0x67   : > { %4058 = vmatpush3.bf16.msra.mxu0 %v4278_v23  ;;  %v2020_v9 = vld [vmem:[#allocation2 + $0xbc] sm:$0x1]  ;;  %v4285_v23 = vld [vmem:[%s5248_s3 + $0xa8] sm:$0xff]   ;;  %535 = vst [vmem:[#allocation2 + $0x4] sm:$0x1] %v534_v20  ;;  %v1378_v30 = vshrl.u32 %v4853_v63, 16  ;;  %v362_v48 = vmul.f32 %v4777_v38, %v340_v39 }
  0x68   : > { %4059 = vmatprep.subr.bf16.mxu0 %v4280_v46  ;;  %3964 = vmatpush3.bf16.msra.mxu1 %v4281_v27  ;;  %v2113_v16 = vshll.u32 %v2020_v9, 16  ;;  %v4284_v27 = vld [vmem:[%s5248_s3 + $0x1a8] sm:$0xff]   ;;  %615 = vst [vmem:[#allocation2 + $0x78] sm:$0xf] %v606_v17  ;;  %v1381_v32 = vshll.u32 %v4853_v63, 16  ;;  %v1366_v35 = vrot.slane %v1364_v26, 4  ;;  %v364_v11 = vmul.f32 %v4777_v38, %v342_v43 }
  0x69   : > { %3965 = vmatprep.subr.bf16.mxu1 %v4283_v57  ;;  %616 = vst [vmem:[#allocation2 + $0x80] sm:$0xf] %v607_v24  ;;  %v1369_v36 = vrot.slane %v1367_v21, 5  ;;  %v398_v41 = vmax.f32 %v382_v29, 0.0  ;;  %v1380_v42 = vrot.slane %v1378_v30, 4  ;;  %v4291_v0 = vld [vmem:[%s5248_s3 + $0xb8] sm:$0xff]   ;;  %v384_v13 = vadd.f32 %v4796_v53, %v362_v48 }
  0x6a   : > { %v4877_v28 = vrot.slane %v2113_v16, 5  ;;  %v867_v45 = vld [vmem:[#allocation2 + $0xc8] sm:$0x1]  ;;  %v1383_v54 = vrot.slane %v1381_v32, 5  ;;  %v4896_v55 = vld [vmem:[#allocation2 + $0x10] sm:$0xf]  ;;  %v386_v19 = vadd.f32 %v4796_v53, %v364_v11 }
  0x6b   : > { %4060 = vmatpush3.bf16.msra.mxu0 %v4280_v46  ;;  %v864_v40 = vld [vmem:[#allocation2 + $0xc0] sm:$0x1]  ;;  %v2022_v22 = vld [vmem:[#allocation2 + $0xc4] sm:$0x1]  ;;  %v2024_v46 = vld [vmem:[#allocation2 + $0xcc] sm:$0x1]  ;;  %v1370_v47 = vor.u32 %v1369_v36, %v1366_v35  ;;  %v3762_v25 = vpack.c.bf16 %v398_v41, %v398_v41 }
  0x6c   : > { %4061 = vmatprep.subr.bf16.mxu0 %v4282_v2  ;;  %3966 = vmatpush3.bf16.msra.mxu1 %v4283_v57  ;;  %v865_v44 = vsel %vm4493_vm4, 0, %v864_v40  ;;  %v2127_v18 = vshll.u32 %v2022_v22, 16  ;;  %v2017_v49 = vld [vmem:[#allocation2 + $0xb0] sm:$0xf]  ;;  %v868_v51 = vsel %vm4493_vm4, 0, %v867_v45  ;;  %v2141_v52 = vshll.u32 %v2024_v46, 16 }
  0x6d   : > { %3967 = vmatprep.subr.bf16.mxu1 %v4285_v23  ;;  %866 = vst [vmem:[#allocation2 + $0xc0] sm:$0x1] %v865_v44  ;;  %v2019_v56 = vld [vmem:[#allocation2 + $0xb8] sm:$0xf]  ;;  %v2090_v57 = vshrl.u32 %v2017_v49, 16  ;;  %v2093_v58 = vshll.u32 %v2017_v49, 16  ;;  %v488_v1 = vsel %vm4493_vm4, %v3762_v25, %v487_v34 }
  0x6e   : > { %869 = vst [vmem:[#allocation2 + $0xc8] sm:$0x1] %v868_v51  ;;  %v4898_v59 = vrot.slane %v2127_v18, 5  ;;  %v4900_v60 = vrot.slane %v1370_v47, 4  ;;  %v2104_v61 = vshrl.u32 %v2019_v56, 16  ;;  %v2107_v31 = vshll.u32 %v2019_v56, 16 }
  0x6f   : > { %4062 = vmatpush3.bf16.msra.mxu0 %v4282_v2  ;;  %v4902_v63 = vrot.slane %v2141_v52, 5  ;;  %v2092_v4 = vrot.slane %v2090_v57, 4  ;;  %v2095_v5 = vrot.slane %v2093_v58, 5  ;;  %v4287_v6 = vld [vmem:[#allocation2 + $0x68] ss:$8 sps:$4 sm:$0xff]   ;;  %v4290_v7 = vld [vmem:[%s5248_s3 + $0x1b8] sm:$0xff]   ;;  %v1384_v2 = vor.u32 %v1383_v54, %v1380_v42 }
  0x70   : > { %4063 = vmatprep.subr.bf16.mxu0 %v4284_v27  ;;  %3968 = vmatpush3.bf16.msra.mxu1 %v4285_v23  ;;  %489 = vst [vmem:[#allocation2 + $0xc] sm:$0x1] %v488_v1  ;;  %v2106_v9 = vrot.slane %v2104_v61, 4  ;;  %v2109_v12 = vrot.slane %v2107_v31, 5  ;;  %v4289_v15 = vld [vmem:[#allocation2 + $0x78] ss:$8 sps:$4 sm:$0xff]  }
  0x71   : > { %3969 = vmatprep.subr.bf16.mxu1 %v4885_v33  ;;  %v2096_v14 = vor.u32 %v2095_v5, %v2092_v4  ;;  %3953 = vmatprep.mubr.bf16.mxu1 %v4287_v6  ;;  %v1337_v16 = vld [vmem:[#allocation2 + $0x4] sm:$0x1]  ;;  %v1385_v17 = vrot.slane %v1384_v2, 4  ;;  %v1392_v20 = vshrl.u32 %v4896_v55, 16  ;;  %v400_v21 = vmax.f32 %v384_v13, 0.0 }
  0x72   : > { %v2110_v23 = vor.u32 %v2109_v12, %v2106_v9  ;;  %v1373_v24 = vshll.u32 %v1337_v16, 16  ;;  %v4923_v26 = vld [vmem:[%s5248_s3 + $0xc0] sm:$0xff]   ;;  %3954 = vmatmul.mubr.bf16.gmra.mrb[4].mxu1 %v4289_v15  ;;  %v402_v34 = vmax.f32 %v386_v19, 0.0  ;;  %v1406_v36 = vshrl.u32 %v4909_v3, 16  ;;  %v499_v18 = vld [vmem:[#allocation2 + $0x1c] sm:$0x1] }
  0x73   : > { %4064 = vmatpush3.bf16.msra.mxu0 %v4284_v27  ;;  %v1395_v27 = vshll.u32 %v4896_v55, 16  ;;  %v2097_v29 = vrot.slane %v2096_v14, 4  ;;  %v4929_v32 = vld [vmem:[%s5248_s3 + $0x1c0] sm:$0xff]   ;;  %v1394_v35 = vrot.slane %v1392_v20, 4  ;;  %v3764_v46 = vpack.c.bf16 %v400_v21, %v400_v21  ;;  %v4292_v11 = vld [vmem:[#allocation2 + $0x8] ss:$8 sps:$4 sm:$0xff]  }
  0x74   : > { %4065 = vmatprep.subr.bf16.mxu0 %v4286_v50  ;;  %3970 = vmatpush3.bf16.msra.mxu1 %v4885_v33  ;;  %v2021_v30 = vld [vmem:[#allocation2 + $0xc0] sm:$0xf]  ;;  %v493_v33 = vld [vmem:[#allocation2 + $0x14] sm:$0x1]  ;;  %v2111_v39 = vrot.slane %v2110_v23, 4  ;;  %v1375_v42 = vrot.slane %v1373_v24, 5  ;;  %v3766_v56 = vpack.c.bf16 %v402_v34, %v402_v34 }
  0x75   : > { %3971 = vmatprep.subr.bf16.mxu1 %v4291_v0  ;;  %v2023_v40 = vld [vmem:[#allocation2 + $0xc8] sm:$0xf]  ;;  %v2118_v22 = vshrl.u32 %v2021_v30, 16  ;;  %v2121_v41 = vshll.u32 %v2021_v30, 16  ;;  %v2102_v43 = vsel %vm4751_vm8, %v2097_v29, %v4872_v10  ;;  %v1397_v61 = vrot.slane %v1395_v27, 5 }
  0x76   : > { %v2132_v44 = vshrl.u32 %v2023_v40, 16  ;;  %v2135_v45 = vshll.u32 %v2023_v40, 16  ;;  %v2116_v47 = vsel %vm4751_vm8, %v2111_v39, %v4877_v28  ;;  %v1376_v55 = vsel %vm4751_vm8, %v4900_v60, %v1375_v42  ;;  %v3379_v12 = vld [vmem:[%s4459_s10 + $0x40] ss:$72 sps:$4 sm:$0xff]   ;;  %v3372_v16 = vld [vmem:[%s4459_s10 + $0x24] sm:$0x1] }
  0x77   : > { %4066 = vmatpush3.bf16.msra.mxu0 %v4286_v50  ;;  %v2120_v48 = vrot.slane %v2118_v22, 4  ;;  %v2123_v49 = vrot.slane %v2121_v41, 5  ;;  %v1339_v51 = vld [vmem:[#allocation2 + $0xc] sm:$0x1]  ;;  %v3589_v52 = vcombine.low %v2102_v43, %v2116_v47  ;;  %v494_v28 = vsel %vm4493_vm4, %v3764_v46, %v493_v33  ;;  %v4294_v29 = vld [vmem:[#allocation2 + $0x18] ss:$8 sps:$4 sm:$0xff]  }
  0x78   : > { %4067 = vmatprep.subr.bf16.mxu0 %v4290_v7  ;;  %3972 = vmatpush3.bf16.msra.mxu1 %v4291_v0  ;;  %v2134_v50 = vrot.slane %v2132_v44, 4  ;;  %v2137_v25 = vrot.slane %v2135_v45, 5  ;;  %v1387_v54 = vshll.u32 %v1339_v51, 16  ;;  %495 = vst [vmem:[#allocation2 + $0x14] sm:$0x1] %v494_v28  ;;  %v1409_v31 = vshll.u32 %v4909_v3, 16 }
  0x79   : > { %3981 = vmatprep.subr.bf16.mxu1 %v4923_v26  ;;  %v2124_v10 = vor.u32 %v2123_v49, %v2120_v48  ;;  %4049 = vmatprep.mubr.bf16.mxu0 %v3589_v52  ;;  %v500_v1 = vsel %vm4493_vm4, %v3766_v56, %v499_v18  ;;  %v1408_v60 = vrot.slane %v1406_v36, 4  ;;  %v1398_v9 = vor.u32 %v1397_v61, %v1394_v35  ;;  %v3374_v20 = vld [vmem:[%s4459_s10 + $0x2c] sm:$0x1]  ;;  %v1346_v35 = vld [vmem:[#allocation2 + $0x28] sm:$0xf] }
  0x7a   : > { %v2138_v57 = vor.u32 %v2137_v25, %v2134_v50  ;;  %v1389_v58 = vrot.slane %v1387_v54, 5  ;;  %501 = vst [vmem:[#allocation2 + $0x1c] sm:$0x1] %v500_v1  ;;  %v1411_v6 = vrot.slane %v1409_v31, 5  ;;  %v351_v14 = vunpack.c.l.bf16 %v3379_v12  ;;  %v4306_v42 = vld [vmem:[#allocation2 + $0x28] ss:$8 sps:$4 sm:$0xff]  }
  0x7b   : > { %4068 = vmatpush3.bf16.msra.mxu0 %v4290_v7  ;;  %v2125_v0 = vrot.slane %v2124_v10, 4  ;;  %v344_v23 = vunpack.c.l.bf16 %v3372_v16  ;;  %v1399_v24 = vrot.slane %v1398_v9, 4  ;;  %v346_v27 = vunpack.c.l.bf16 %v3374_v20  ;;  %v3376_v46 = vld [vmem:[%s4459_s10 + $0x34] sm:$0x1]  ;;  %v3378_v18 = vld [vmem:[%s4459_s10 + $0x3c] sm:$0x1] }
  0x7c   : > { %4077 = vmatprep.subr.bf16.mxu0 %v4929_v32  ;;  %v2139_v4 = vrot.slane %v2138_v57, 4  ;;  %v1390_v5 = vsel %vm4751_vm8, %v1385_v17, %v1389_v58  ;;  %v1412_v15 = vor.u32 %v1411_v6, %v1408_v60  ;;  %v373_v19 = vmul.f32 %v4777_v38, %v351_v14  ;;  %v526_v51 = vld [vmem:[#allocation2 + $0x40] sm:$0xf]  ;;  %v505_v50 = vld [vmem:[#allocation2 + $0x24] sm:$0x1]  ;;  %v4296_v54 = vld [vmem:[%s5248_s3 + $0x1c8] sm:$0xff]  }
  0x7d   : > { %v2130_v7 = vsel %vm4751_vm8, %v2125_v0, %v4898_v59  ;;  %v3503_v2 = vcombine.low %v1376_v55, %v1390_v5  ;;  %v576_v59 = vunpack.c.h.bf16 %v3379_v12  ;;  %v366_v33 = vmul.f32 %v4777_v38, %v344_v23  ;;  %v511_v56 = vld [vmem:[#allocation2 + $0x2c] sm:$0x1]  ;;  %v4299_v9 = vld [vmem:[%s5248_s3 + $0xd0] sm:$0xff]  }
  0x7e   : > { %v2144_v3 = vsel %vm4751_vm8, %v2139_v4, %v4902_v63  ;;  %v1344_v63 = vld [vmem:[#allocation2 + $0x20] sm:$0xf]  ;;  %v395_v34 = vadd.f32 %v4796_v53, %v373_v19  ;;  %v1413_v22 = vrot.slane %v1412_v15, 4  ;;  %v368_v43 = vmul.f32 %v4777_v38, %v346_v27  ;;  %v4297_v60 = vld [vmem:[%s5248_s3 + $0xc8] sm:$0xff]   ;;  %v1348_v12 = vld [vmem:[#allocation2 + $0x30] sm:$0xf] }
  0x7f   : > { %v3590_v13 = vcombine.low %v2130_v7, %v2144_v3  ;;  %3973 = vmatprep.mubr.bf16.mxu1 %v3503_v2  ;;  %v1341_v17 = vld [vmem:[#allocation2 + $0x14] sm:$0x1]  ;;  %v1420_v36 = vshrl.u32 %v1344_v63, 16  ;;  %v1423_v39 = vshll.u32 %v1344_v63, 16  ;;  %v388_v45 = vadd.f32 %v4796_v53, %v366_v33  ;;  %v1350_v15 = vld [vmem:[#allocation2 + $0x38] sm:$0xf] }
  0x80   : > { %v1401_v21 = vshll.u32 %v1341_v17, 16  ;;  %v411_v44 = vmax.f32 %v395_v34, 0.0  ;;  %v584_v47 = vmul.f32 %v4777_v38, %v576_v59  ;;  %v390_v52 = vadd.f32 %v4796_v53, %v368_v43  ;;  %v4298_v7 = vld [vmem:[%s5248_s3 + $0x1d0] sm:$0xff]  }
  0x81   : > { %4050 = vmatmul.mubr.bf16.gmra.mrb[4].mxu0 %v3590_v13  ;;  %v1343_v30 = vld [vmem:[#allocation2 + $0x1c] sm:$0x1]  ;;  %v1434_v25 = vshrl.u32 %v1346_v35, 16  ;;  %v404_v55 = vmax.f32 %v388_v45, 0.0  ;;  %v1422_v28 = vrot.slane %v1420_v36, 4  ;;  %v1425_v57 = vrot.slane %v1423_v39, 5 }
  0x82   : > { %4069 = vmatprep.mubr.bf16.mxu0 %v4292_v11  ;;  %v1403_v40 = vrot.slane %v1401_v21, 5  ;;  %v1415_v41 = vshll.u32 %v1343_v30, 16  ;;  %v3775_v10 = vpack.c.bf16 %v411_v44, %v411_v44  ;;  %v406_v61 = vmax.f32 %v390_v52, 0.0  ;;  %v517_v20 = vld [vmem:[#allocation2 + $0x34] sm:$0x1]  ;;  %v4301_v30 = vld [vmem:[%s5248_s3 + $0xd8] sm:$0xff]  }
  0x83   : > { %v348_v31 = vunpack.c.l.bf16 %v3376_v46  ;;  %v350_v0 = vunpack.c.l.bf16 %v3378_v18  ;;  %v3768_v5 = vpack.c.bf16 %v404_v55, %v404_v55  ;;  %v1437_v6 = vshll.u32 %v1346_v35, 16  ;;  %v4303_v45 = vld [vmem:[%s5248_s3 + $0xe0] sm:$0xff]  }
  0x84   : > { %v1404_v48 = vsel %vm4751_vm8, %v1399_v24, %v1403_v40  ;;  %v1417_v49 = vrot.slane %v1415_v41, 5  ;;  %v527_v4 = vsel %vm4532_vm5, %v3775_v10, %v526_v51  ;;  %v3770_v2 = vpack.c.bf16 %v406_v61, %v406_v61  ;;  %v523_v24 = vld [vmem:[#allocation2 + $0x3c] sm:$0x1]  ;;  %v4304_v10 = vld [vmem:[%s5248_s3 + $0x1e8] sm:$0xff]   ;;  %v4308_v61 = vld [vmem:[%s5248_s3 + $0x1f0] sm:$0xff]  }
  0x85   : > { %528 = vst [vmem:[#allocation2 + $0x40] sm:$0xf] %v527_v4  ;;  %v370_v3 = vmul.f32 %v4777_v38, %v348_v31  ;;  %v372_v11 = vmul.f32 %v4777_v38, %v350_v0  ;;  %v1426_v16 = vor.u32 %v1425_v57, %v1422_v28  ;;  %v1436_v17 = vrot.slane %v1434_v25, 4  ;;  %v4305_v28 = vld [vmem:[%s5248_s3 + $0xe8] sm:$0xff]   ;;  %v4312_v0 = vld [vmem:[#allocation2 + $0x50] ss:$8 sps:$4 sm:$0xff]  }
  0x86   : > { %v1418_v58 = vsel %vm4751_vm8, %v1413_v22, %v1417_v49  ;;  %v512_v13 = vsel %vm4493_vm4, %v3770_v2, %v511_v56  ;;  %v1439_v19 = vrot.slane %v1437_v6, 5  ;;  %v1448_v21 = vshrl.u32 %v1348_v12, 16 }
  0x87   : > { %v3504_v1 = vcombine.low %v1404_v48, %v1418_v58  ;;  %v392_v14 = vadd.f32 %v4796_v53, %v370_v3  ;;  %v394_v38 = vadd.f32 %v4796_v53, %v372_v11  ;;  %513 = vst [vmem:[#allocation2 + $0x2c] sm:$0x1] %v512_v13  ;;  %v592_v27 = vadd.f32 %v4796_v53, %v584_v47  ;;  %v4302_v53 = vld [vmem:[%s5248_s3 + $0x1e0] sm:$0xff]   ;;  %v4315_v13 = vld [vmem:[#allocation2 + $0x90] ss:$8 sps:$4 sm:$0xff]  }
  0x88   : > { %v1451_v63 = vshll.u32 %v1348_v12, 16  ;;  %v1465_v35 = vshll.u32 %v1350_v15, 16  ;;  %v1427_v39 = vrot.slane %v1426_v16, 4  ;;  %v1440_v40 = vor.u32 %v1439_v19, %v1436_v17  ;;  %v4310_v12 = vld [vmem:[%s5248_s3 + $0x1f8] sm:$0xff]   ;;  %v2679_v16 = vld [vmem:[#allocation2 + $0x8] sm:$0xf] }
  0x89   : > { %4070 = vmatmul.mubr.bf16.vlgmr.msra.gmra.mrb[0].mxu0 %v4294_v29  ;;  %3974 = vmatmul.mubr.bf16.vlgmr.msra.gmra.mrb[0].mxu1 %v3504_v1  ;;  %v408_v23 = vmax.f32 %v392_v14, 0.0  ;;  %v410_v59 = vmax.f32 %v394_v38, 0.0  ;;  %v1462_v29 = vshrl.u32 %v1350_v15, 16  ;;  %v600_v22 = vmax.f32 %v592_v27, 0.0  ;;  %v4311_v38 = vld [vmem:[%s5248_s3 + $0xf8] sm:$0xff]   ;;  %v4314_v27 = vld [vmem:[%s5248_s3 + $0x200] sm:$0xff]  }
  0x8a   : > { %4078 = vmatpush3.bf16.msra.mxu0 %v4929_v32  ;;  %4073 = vmatprep.mubr.bf16.mxu0 %v4306_v42  ;;  %v506_v32 = vsel %vm4493_vm4, %v3768_v5, %v505_v50  ;;  %v1450_v44 = vrot.slane %v1448_v21, 4  ;;  %v1453_v18 = vrot.slane %v1451_v63, 5  ;;  %v1467_v52 = vrot.slane %v1465_v35, 5  ;;  %v2680_v19 = vld [vmem:[#allocation2 + $0xc] sm:$0x1] }
  0x8b   : > { %4079 = vmatprep.subr.bf16.mxu0 %v4296_v54  ;;  %3982 = vmatpush3.bf16.msra.mxu1 %v4923_v26  ;;  %507 = vst [vmem:[#allocation2 + $0x24] sm:$0x1] %v506_v32  ;;  %v4300_v26 = vld [vmem:[%s5248_s3 + $0x1d8] sm:$0xff]   ;;  %v3772_v34 = vpack.c.bf16 %v408_v23, %v408_v23  ;;  %v3774_v33 = vpack.c.bf16 %v410_v59, %v410_v59  ;;  %v1464_v47 = vrot.slane %v1462_v29, 4  ;;  %v1441_v50 = vrot.slane %v1440_v40, 4 }
  0x8c   : > { %3983 = vmatprep.subr.bf16.mxu1 %v4297_v60  ;;  %v557_v36 = vld [vmem:[#allocation2 + $0x40] sm:$0x1]  ;;  %v608_v48 = vpack.c.bf16 %v600_v22, %v600_v22  ;;  %v1454_v56 = vor.u32 %v1453_v18, %v1450_v44  ;;  %v2704_v23 = vshrl.u32 %v2679_v16, 16  ;;  %v2707_v59 = vshll.u32 %v2679_v16, 16  ;;  %v2691_v16 = vld [vmem:[#allocation2 + $0x38] sm:$0xf] }
  0x8d   : > { %v558_v41 = vsel %vm4493_vm4, 0, %v557_v36  ;;  %v518_v42 = vsel %vm4493_vm4, %v3772_v34, %v517_v20  ;;  %v524_v43 = vsel %vm4493_vm4, %v3774_v33, %v523_v24  ;;  %v1468_v58 = vor.u32 %v1467_v52, %v1464_v47  ;;  %v2681_v20 = vld [vmem:[#allocation2 + $0x10] sm:$0xf]  ;;  %v4313_v35 = vld [vmem:[#allocation2 + $0x60] ss:$8 sps:$4 sm:$0xff]  }
  0x8e   : > { %4080 = vmatpush3.bf16.msra.mxu0 %v4296_v54  ;;  %559 = vst [vmem:[#allocation2 + $0x40] sm:$0x1] %v558_v41  ;;  %519 = vst [vmem:[#allocation2 + $0x34] sm:$0x1] %v518_v42  ;;  %v1347_v49 = vld [vmem:[#allocation2 + $0x2c] sm:$0x1] }
  0x8f   : > { %4081 = vmatprep.subr.bf16.mxu0 %v4298_v7  ;;  %3984 = vmatpush3.bf16.msra.mxu1 %v4297_v60  ;;  %525 = vst [vmem:[#allocation2 + $0x3c] sm:$0x1] %v524_v43  ;;  %v1443_v25 = vshll.u32 %v1347_v49, 16  ;;  %617 = vst [vmem:[#allocation2 + $0x88] sm:$0xf] %v608_v48  ;;  %v1455_v6 = vrot.slane %v1454_v56, 4 }
  0x90   : > { %3985 = vmatprep.subr.bf16.mxu1 %v4299_v9  ;;  %v1469_v2 = vrot.slane %v1468_v58, 4  ;;  %v2713_v24 = vshll.u32 %v2680_v19, 16  ;;  %v2718_v21 = vshrl.u32 %v2681_v20, 16  ;;  %v2721_v63 = vshll.u32 %v2681_v20, 16  ;;  %v4316_v41 = vld [vmem:[#allocation2 + $0xa0] ss:$8 sps:$4 sm:$0xff]  }
  0x91   : > { %v1445_v55 = vrot.slane %v1443_v25, 5  ;;  %v2709_v34 = vrot.slane %v2707_v59, 5  ;;  %v4317_v42 = vld [vmem:[%s5248_s3 + $0x208] sm:$0xff]   ;;  %v4321_v43 = vld [vmem:[#allocation2 + $0xb0] ss:$8 sps:$4 sm:$0xff]   ;;  %v4324_v59 = vld [vmem:[%s5248_s3 + $0x220] sm:$0xff]  }
  0x92   : > { %4082 = vmatpush3.bf16.msra.mxu0 %v4298_v7  ;;  %v1345_v46 = vld [vmem:[#allocation2 + $0x24] sm:$0x1]  ;;  %v2720_v33 = vrot.slane %v2718_v21, 4  ;;  %v2723_v36 = vrot.slane %v2721_v63, 5  ;;  %v2715_v22 = vrot.slane %v2713_v24, 5  ;;  %v4320_v25 = vld [vmem:[%s5248_s3 + $0x210] sm:$0xff]  }
  0x93   : > { %4083 = vmatprep.subr.bf16.mxu0 %v4300_v26  ;;  %3986 = vmatpush3.bf16.msra.mxu1 %v4299_v9  ;;  %v1429_v51 = vshll.u32 %v1345_v46, 16  ;;  %v1446_v31 = vsel %vm4751_vm8, %v1441_v50, %v1445_v55  ;;  %v4309_v9 = vld [vmem:[%s5248_s3 + $0xf0] sm:$0xff]   ;;  %v2688_v18 = vld [vmem:[#allocation2 + $0x2c] sm:$0x1]  ;;  %v4331_v20 = vld [vmem:[%s5247_s2] ss:$0 sm:$0xff] }
  0x94   : > { %3987 = vmatprep.subr.bf16.mxu1 %v4301_v30  ;;  %v2724_v44 = vor.u32 %v2723_v36, %v2720_v33  ;;  %v2689_v47 = vld [vmem:[#allocation2 + $0x30] sm:$0xf]  ;;  %v2769_v55 = vshll.u32 %v2688_v18, 16 }
  0x95   : > { %v1431_v54 = vrot.slane %v1429_v51, 5  ;;  %v4307_v1 = vld [vmem:[#allocation2 + $0x38] ss:$8 sps:$4 sm:$0xff]   ;;  %v1349_v4 = vld [vmem:[#allocation2 + $0x34] sm:$0x1]  ;;  %v2774_v56 = vshrl.u32 %v2689_v47, 16 }
  0x96   : > { %4084 = vmatpush3.bf16.msra.mxu0 %v4300_v26  ;;  %v1351_v5 = vld [vmem:[#allocation2 + $0x3c] sm:$0x1]  ;;  %v1457_v7 = vshll.u32 %v1349_v4, 16  ;;  %v2682_v26 = vld [vmem:[#allocation2 + $0x14] sm:$0x1]  ;;  %v2725_v48 = vrot.slane %v2724_v44, 4 }
  0x97   : > { %4085 = vmatprep.subr.bf16.mxu0 %v4302_v53  ;;  %3988 = vmatpush3.bf16.msra.mxu1 %v4301_v30  ;;  %v1432_v57 = vsel %vm4751_vm8, %v1427_v39, %v1431_v54  ;;  %v1471_v3 = vshll.u32 %v1351_v5, 16  ;;  %v2727_v29 = vshll.u32 %v2682_v26, 16  ;;  %v2706_v30 = vrot.slane %v2704_v23, 4  ;;  %v4318_v39 = vld [vmem:[#allocation2 + $0x70] ss:$8 sps:$4 sm:$0xff]  }
  0x98   : > { %3989 = vmatprep.subr.bf16.mxu1 %v4303_v45  ;;  %v3505_v60 = vcombine.low %v1432_v57, %v1446_v31  ;;  %4074 = vmatmul.mubr.bf16.gmra.mrb[4].mxu0 %v4307_v1  ;;  %v1459_v11 = vrot.slane %v1457_v7, 5  ;;  %v2690_v52 = vld [vmem:[#allocation2 + $0x34] sm:$0x1]  ;;  %v4319_v57 = vld [vmem:[#allocation2 + $0x80] ss:$8 sps:$4 sm:$0xff]   ;;  %v2776_v31 = vrot.slane %v2774_v56, 4 }
  0x99   : > { %v1473_v32 = vrot.slane %v1471_v3, 5  ;;  %4093 = vmatprep.mubr.bf16.mxu0 %v4312_v0  ;;  %v2710_v40 = vor.u32 %v2709_v34, %v2706_v30  ;;  %v2777_v0 = vshll.u32 %v2689_v47, 16  ;;  %v2783_v1 = vshll.u32 %v2690_v52, 16  ;;  %v4322_v7 = vld [vmem:[#allocation2 + $0xc0] ss:$8 sps:$4 sm:$0xff]  }
  0x9a   : > { %4086 = vmatpush3.bf16.msra.mxu0 %v4302_v53  ;;  %3977 = vmatprep.mubr.bf16.mxu1 %v3505_v60  ;;  %v1460_v14 = vsel %vm4751_vm8, %v1455_v6, %v1459_v11  ;;  %v2687_v53 = vld [vmem:[#allocation2 + $0x28] sm:$0xf]  ;;  %v4323_v60 = vld [vmem:[%s5248_s3 + $0x218] sm:$0xff]   ;;  %v2771_v3 = vrot.slane %v2769_v55, 5  ;;  %v2693_v23 = vld [vmem:[#allocation2 + $0x40] sm:$0xf] }
  0x9b   : > { %4087 = vmatprep.subr.bf16.mxu0 %v4304_v10  ;;  %3990 = vmatpush3.bf16.msra.mxu1 %v4303_v45  ;;  %v1474_v15 = vsel %vm4751_vm8, %v1469_v2, %v1473_v32  ;;  %v2729_v45 = vrot.slane %v2727_v29, 5  ;;  %v2711_v46 = vrot.slane %v2710_v40, 4  ;;  %v2760_v49 = vshrl.u32 %v2687_v53, 16  ;;  %v2685_v2 = vld [vmem:[#allocation2 + $0x20] sm:$0xf] }
  0x9c   : > { %3991 = vmatprep.subr.bf16.mxu1 %v4305_v28  ;;  %v3506_v17 = vcombine.low %v1460_v14, %v1474_v15  ;;  %v2763_v50 = vshll.u32 %v2687_v53, 16  ;;  %v2779_v11 = vrot.slane %v2777_v0, 5  ;;  %v2785_v15 = vrot.slane %v2783_v1, 5  ;;  %v2686_v44 = vld [vmem:[#allocation2 + $0x24] sm:$0x1] }
  0x9d   : > { %v2716_v51 = vsel %vm4751_vm8, %v2711_v46, %v2715_v22  ;;  %v2730_v54 = vsel %vm4751_vm8, %v2725_v48, %v2729_v45  ;;  %v2749_v19 = vshll.u32 %v2685_v2, 16  ;;  %v2788_v29 = vshrl.u32 %v2691_v16, 16  ;;  %v2692_v47 = vld [vmem:[#allocation2 + $0x3c] sm:$0x1] }
  0x9e   : > { %4088 = vmatpush3.bf16.msra.mxu0 %v4304_v10  ;;  %3978 = vmatmul.mubr.bf16.gmra.mrb[4].mxu1 %v3506_v17  ;;  %v2762_v10 = vrot.slane %v2760_v49, 4  ;;  %v2765_v58 = vrot.slane %v2763_v50, 5  ;;  %v3671_v4 = vcombine.low %v2716_v51, %v2730_v54  ;;  %v2746_v17 = vshrl.u32 %v2685_v2, 16  ;;  %v4326_v54 = vld [vmem:[%s5248_s3 + $0x230] sm:$0xff]  }
  0x9f   : > { %4089 = vmatprep.subr.bf16.mxu0 %v4308_v61  ;;  %3992 = vmatpush3.bf16.msra.mxu1 %v4305_v28  ;;  %v3380_v28 = vld [vmem:[%s4459_s10 + $0x44] sm:$0x1]  ;;  %v2791_v30 = vshll.u32 %v2691_v16, 16  ;;  %v2802_v36 = vshrl.u32 %v2693_v23, 16  ;;  %v2751_v22 = vrot.slane %v2749_v19, 5  ;;  %v2790_v46 = vrot.slane %v2788_v29, 4 }
  0xa0   : > { %3993 = vmatprep.subr.bf16.mxu1 %v4309_v9  ;;  %3997 = vmatprep.mubr.bf16.mxu1 %v4315_v13  ;;  %v2766_v5 = vor.u32 %v2765_v58, %v2762_v10  ;;  %v352_v6 = vunpack.c.l.bf16 %v3380_v28  ;;  %v2748_v40 = vrot.slane %v2746_v17, 4  ;;  %v2797_v55 = vshll.u32 %v2692_v47, 16  ;;  %v3683_v29 = vld [vmem:[%s5249_s4] ss:$0 sm:$0xff] }
  0xa1   : > { %v2793_v18 = vrot.slane %v2791_v30, 5  ;;  %v2804_v48 = vrot.slane %v2802_v36, 4 }
  0xa2   : > { %4090 = vmatpush3.bf16.msra.mxu0 %v4308_v61  ;;  %v2683_v61 = vld [vmem:[#allocation2 + $0x18] sm:$0xf]  ;;  %v2767_v32 = vrot.slane %v2766_v5, 4  ;;  %v2752_v50 = vor.u32 %v2751_v22, %v2748_v40 }
  0xa3   : > { %4091 = vmatprep.subr.bf16.mxu0 %v4310_v12  ;;  %3994 = vmatpush3.bf16.msra.mxu1 %v4309_v9  ;;  %v2732_v9 = vshrl.u32 %v2683_v61, 16  ;;  %v2735_v14 = vshll.u32 %v2683_v61, 16  ;;  %v2794_v10 = vor.u32 %v2793_v18, %v2790_v46 }
  0xa4   : > { %3995 = vmatprep.subr.bf16.mxu1 %v4311_v38  ;;  %v2772_v24 = vsel %vm4751_vm8, %v2767_v32, %v2771_v3  ;;  %v2753_v58 = vrot.slane %v2752_v50, 4 }
  0xa5   : > { %v2737_v34 = vrot.slane %v2735_v14, 5  ;;  %v2795_v1 = vrot.slane %v2794_v10, 4 }
  0xa6   : > { %4092 = vmatpush3.bf16.msra.mxu0 %v4310_v12  ;;  %v4330_v12 = vld [vmem:[%s5246_s1] ss:$0 sm:$0xff] }
  0xa7   : > { %4101 = vmatprep.subr.bf16.mxu0 %v4314_v27  ;;  %3996 = vmatpush3.bf16.msra.mxu1 %v4311_v38  ;;  %v374_v13 = vmul.f32 %v4330_v12, %v352_v6  ;;  %v2780_v38 = vor.u32 %v2779_v11, %v2776_v31  ;;  %v4327_v31 = vld [vmem:[%s5248_s3 + $0x238] sm:$0xff]  }
  0xa8   : > { %4125 = vmatprep.subr.bf16.mxu1 %v4314_v27 }
  0xa9   : > { %4094 = vmatmul.mubr.bf16.vlgmr.msra.gmra.mrb[0].mxu0 %v4313_v35  ;;  %v396_v26 = vadd.f32 %v4331_v20, %v374_v13  ;;  %v2781_v21 = vrot.slane %v2780_v38, 4  ;;  %v529_v35 = vld [vmem:[#allocation2 + $0x44] sm:$0x1] }
  0xaa   : > { %4102 = vmatpush3.bf16.msra.mxu0 %v4314_v27  ;;  %4097 = vmatprep.mubr.bf16.mxu0 %v4318_v39  ;;  %v2805_v39 = vshll.u32 %v2693_v23, 16 }
  0xab   : > { %3998 = vmatmul.mubr.bf16.vlgmr.msra.gmra.mrb[0].mxu1 %v4316_v41  ;;  %4103 = vmatprep.subr.bf16.mxu0 %v4317_v42  ;;  %v412_v63 = vmax.f32 %v396_v26, 0.0  ;;  %v2786_v33 = vsel %vm4751_vm8, %v2781_v21, %v2785_v15 }
  0xac   : > { %4133 = vmatpush3.bf16.msra.mxu1 %v4314_v27  ;;  %4001 = vmatprep.mubr.bf16.mxu1 %v4321_v43  ;;  %v2734_v27 = vrot.slane %v2732_v9, 4  ;;  %v3673_v53 = vcombine.low %v2772_v24, %v2786_v33  ;;  %v2684_v43 = vld [vmem:[#allocation2 + $0x1c] sm:$0x1]  ;;  %v2807_v49 = vrot.slane %v2805_v39, 5  ;;  %v3684_v33 = vld [vmem:[%s5250_s5] ss:$0 sm:$0xff] }
  0xad   : > { %4126 = vmatprep.subr.bf16.mxu1 %v4317_v42  ;;  %v3776_v41 = vpack.c.bf16 %v412_v63, %v412_v63  ;;  %v2741_v52 = vshll.u32 %v2684_v43, 16 }
  0xae   : > { %4104 = vmatpush3.bf16.msra.mxu0 %v4317_v42  ;;  %v2738_v51 = vor.u32 %v2737_v34, %v2734_v27  ;;  %v2808_v56 = vor.u32 %v2807_v49, %v2804_v48 }
  0xaf   : > { %4105 = vmatprep.subr.bf16.mxu0 %v4320_v25  ;;  %v530_v45 = vsel %vm4493_vm4, %v3776_v41, %v529_v35 }
  0xb0   : > { %4134 = vmatpush3.bf16.msra.mxu1 %v4317_v42  ;;  %v4325_v42 = vld [vmem:[%s5248_s3 + $0x228] sm:$0xff]   ;;  %531 = vst [vmem:[#allocation2 + $0x44] sm:$0x1] %v530_v45  ;;  %v2739_v28 = vrot.slane %v2738_v51, 4 }
  0xb1   : > { %4098 = vmatmul.mubr.bf16.gmra.mrb[4].mxu0 %v4319_v57  ;;  %4127 = vmatprep.subr.bf16.mxu1 %v4320_v25  ;;  %v2743_v57 = vrot.slane %v2741_v52, 5 }
  0xb2   : > { %4106 = vmatpush3.bf16.msra.mxu0 %v4320_v25  ;;  %4117 = vmatprep.mubr.bf16.mxu0 %v3671_v4  ;;  %v2809_v4 = vrot.slane %v2808_v56, 4 }
  0xb3   : > { %4002 = vmatmul.mubr.bf16.gmra.mrb[4].mxu1 %v4322_v7  ;;  %4107 = vmatprep.subr.bf16.mxu0 %v4323_v60  ;;  %v2744_v6 = vsel %vm4751_vm8, %v2739_v28, %v2743_v57 }
  0xb4   : > { %4135 = vmatpush3.bf16.msra.mxu1 %v4320_v25  ;;  %4121 = vmatprep.mubr.bf16.mxu1 %v3673_v53  ;;  %v2755_v25 = vshll.u32 %v2686_v44, 16 }
  0xb5   : > { %4128 = vmatprep.subr.bf16.mxu1 %v4323_v60 }
  0xb6   : > { %4108 = vmatpush3.bf16.msra.mxu0 %v4323_v60  ;;  %v2757_v61 = vrot.slane %v2755_v25, 5 }
  0xb7   : > { %4109 = vmatprep.subr.bf16.mxu0 %v4324_v59  ;;  %v2694_v0 = vld [vmem:[#allocation2 + $0x44] sm:$0x1] }
  0xb8   : > { %4136 = vmatpush3.bf16.msra.mxu1 %v4323_v60  ;;  %v2799_v60 = vrot.slane %v2797_v55, 5  ;;  %v2811_v5 = vshll.u32 %v2694_v0, 16  ;;  %v2758_v7 = vsel %vm4751_vm8, %v2753_v58, %v2757_v61 }
  0xb9   : > { %4129 = vmatprep.subr.bf16.mxu1 %v4324_v59  ;;  %v3672_v11 = vcombine.low %v2744_v6, %v2758_v7 }
  0xba   : > { %4110 = vmatpush3.bf16.msra.mxu0 %v4324_v59  ;;  %v2813_v2 = vrot.slane %v2811_v5, 5  ;;  %v2800_v3 = vsel %vm4751_vm8, %v2795_v1, %v2799_v60 }
  0xbb   : > { %4111 = vmatprep.subr.bf16.mxu0 %v4325_v42 }
  0xbc   : > { %4137 = vmatpush3.bf16.msra.mxu1 %v4324_v59  ;;  %v2814_v9 = vsel %vm4751_vm8, %v2809_v4, %v2813_v2 }
  0xbd   : > { %4130 = vmatprep.subr.bf16.mxu1 %v4325_v42  ;;  %v3674_v32 = vcombine.low %v2800_v3, %v2814_v9 }
  0xbe   : > { %4112 = vmatpush3.bf16.msra.mxu0 %v4325_v42 }
  0xbf   : > { %4113 = vmatprep.subr.bf16.mxu0 %v4326_v54 }
  0xc0   : > { %4138 = vmatpush3.bf16.msra.mxu1 %v4325_v42 }
  0xc1   : > { %4131 = vmatprep.subr.bf16.mxu1 %v4326_v54 }
  0xc2   : > { %4114 = vmatpush3.bf16.msra.mxu0 %v4326_v54 }
  0xc3   : > { %4115 = vmatprep.subr.bf16.mxu0 %v4327_v31 }
  0xc4   : > { %4139 = vmatpush3.bf16.msra.mxu1 %v4326_v54 }
  0xc5   : > { %4132 = vmatprep.subr.bf16.mxu1 %v4327_v31 }
  0xc6   : > { %4116 = vmatpush3.bf16.msra.mxu0 %v4327_v31 }
  0xc8   : > { %4140 = vmatpush3.bf16.msra.mxu1 %v4327_v31 }
  0xc9   : > { %4118 = vmatmul.mubr.bf16.vlgmr.msra.gmra.mrb[0].mxu0 %v3672_v11 }
  0xcb   : > { %4122 = vmatmul.mubr.bf16.vlgmr.msra.gmra.mrb[8].mxu1 %v3674_v32 }
 0x17e   : > { %v3999_v12 = vpop.f32.mrb[0].mxu1 }
 0x17f   : > { %v1776_v13 = vpop.f32.mrb[1].mxu1 }
 0x180   : > { %v4000_v14 = vpop.f32.mrb[2].mxu1 }
 0x181   : > { %v1779_v38 = vpop.f32.mrb[3].mxu1 }
 0x184   : > { %v4099_v15 = vpop.f32.mrb[4].mxu0 }
 0x185   : > { %v2648_v16 = vpop.f32.mrb[5].mxu0 }
 0x186   : > { %v4100_v17 = vpop.f32.mrb[6].mxu0  ;;  %v4003_v19 = vpop.f32.mrb[4].mxu1 }
 0x187   : > { %v4145_v20 = vadd.f32 %v4099_v15, %v4003_v19  ;;  %v2651_v26 = vpop.f32.mrb[7].mxu0  ;;  %v1792_v23 = vpop.f32.mrb[5].mxu1  ;;  %v3693_v19 = vld [vmem:[%s4437_s18 + $0x8] sm:$0xf] }
 0x188   : > { %v4147_v59 = vadd.f32 %v2648_v16, %v1792_v23  ;;  %v4004_v24 = vpop.f32.mrb[6].mxu1 }
 0x189   : > { %v4149_v62 = vadd.f32 %v4100_v17, %v4004_v24  ;;  %v1795_v21 = vpop.f32.mrb[7].mxu1  ;;  %v3695_v24 = vld [vmem:[%s4437_s18 + $0xc] sm:$0x1] }
 0x18a   : > { %v4151_v27 = vadd.f32 %v2651_v26, %v1795_v21 }
 0x19c   : > { %v4119_v63 = vpop.f32.mrb[0].mxu0 }
 0x19d   : > { %v4141_v30 = vadd.f32 %v4119_v63, %v3999_v12  ;;  %v2930_v34 = vpop.f32.mrb[1].mxu0  ;;  %v3701_v12 = vld [vmem:[%s4437_s18 + $0x18] sm:$0xf] }
 0x19e   : > { %v4142_v35 = vadd.f32 %v2930_v34, %v1776_v13  ;;  %v4120_v36 = vpop.f32.mrb[2].mxu0  ;;  %v4123_v39 = vpop.f32.mrb[8].mxu1  ;;  %v3703_v13 = vld [vmem:[%s4437_s18 + $0x1c] sm:$0x1]  ;;  %v3705_v34 = vld [vmem:[%s4437_s18 + $0x20] sm:$0xf] }
 0x19f   : > { %v2994_v40 = vmul.f32 %v4141_v30, %v3683_v29  ;;  %v4143_v22 = vadd.f32 %v4120_v36, %v4000_v14  ;;  %v2933_v53 = vpop.f32.mrb[3].mxu0  ;;  %v4146_v41 = vadd.f32 %v4145_v20, %v4123_v39  ;;  %v2946_v42 = vpop.f32.mrb[9].mxu1  ;;  %v3707_v39 = vld [vmem:[%s4437_s18 + $0x24] sm:$0x1] }
 0x1a0   : > { %v2992_v43 = vmul.f32 %v4142_v35, %v3683_v29  ;;  %v4144_v44 = vadd.f32 %v2933_v53, %v1779_v38  ;;  %v4148_v45 = vadd.f32 %v4147_v59, %v2946_v42  ;;  %v4124_v46 = vpop.f32.mrb[10].mxu1 }
 0x1a1   : > { %v3009_v18 = vadd.f32 %v3684_v33, %v2994_v40  ;;  %v2995_v47 = vmul.f32 %v4143_v22, %v3683_v29  ;;  %v2998_v48 = vmul.f32 %v4146_v41, %v3683_v29  ;;  %v4150_v49 = vadd.f32 %v4149_v62, %v4124_v46  ;;  %v2949_v51 = vpop.f32.mrb[11].mxu1 }
 0x1a2   : > { %v3007_v52 = vadd.f32 %v3684_v33, %v2992_v43  ;;  %v2993_v50 = vmul.f32 %v4144_v44, %v3683_v29  ;;  %v2996_v25 = vmul.f32 %v4148_v45, %v3683_v29  ;;  %v4152_v54 = vadd.f32 %v4151_v27, %v2949_v51  ;;  %v3697_v44 = vld [vmem:[%s4437_s18 + $0x10] sm:$0xf]  ;;  %v3699_v45 = vld [vmem:[%s4437_s18 + $0x14] sm:$0x1]  ;;  %v3719_v51 = vld [vmem:[%s4437_s18 + $0x3c] sm:$0x1] }
 0x1a3   : > { %v3017_v10 = vmax.f32 %v3009_v18, 0.0  ;;  %v3010_v55 = vadd.f32 %v3684_v33, %v2995_v47  ;;  %v3013_v56 = vadd.f32 %v3684_v33, %v2998_v48  ;;  %v2999_v28 = vmul.f32 %v4150_v49, %v3683_v29  ;;  %v3717_v49 = vld [vmem:[%s4437_s18 + $0x38] sm:$0xf] }
 0x1a4   : > { %v3015_v57 = vmax.f32 %v3007_v52, 0.0  ;;  %v3008_v58 = vadd.f32 %v3684_v33, %v2993_v50  ;;  %v3011_v61 = vadd.f32 %v3684_v33, %v2996_v25  ;;  %v2997_v31 = vmul.f32 %v4152_v54, %v3683_v29 }
 0x1a5   : > { %v3795_v0 = vpack.c.bf16 %v3017_v10, %v3017_v10  ;;  %v3018_v1 = vmax.f32 %v3010_v55, 0.0  ;;  %v3021_v60 = vmax.f32 %v3013_v56, 0.0  ;;  %v5096_v4 = vadd.f32 %v3684_v33, %v2999_v28 }
 0x1a6   : > { %v3793_v5 = vpack.c.bf16 %v3015_v57, %v3015_v57  ;;  %v3016_v6 = vmax.f32 %v3008_v58, 0.0  ;;  %v3019_v7 = vmax.f32 %v3011_v61, 0.0  ;;  %v5098_v2 = vadd.f32 %v3684_v33, %v2997_v31  ;;  %v3709_v61 = vld [vmem:[%s4437_s18 + $0x28] sm:$0xf]  ;;  %v3711_v31 = vld [vmem:[%s4437_s18 + $0x2c] sm:$0x1] }
 0x1a7   : > { %v3072_v3 = vshrl.u32 %v3795_v0, 16  ;;  %v3075_v11 = vshll.u32 %v3795_v0, 16  ;;  %v3796_v9 = vpack.c.bf16 %v3018_v1, %v3018_v1  ;;  %v3799_v32 = vpack.c.bf16 %v3021_v60, %v3021_v60 }
 0x1a8   : > { %v3056_v14 = vshrl.u32 %v3793_v5, 16  ;;  %v3059_v38 = vshll.u32 %v3793_v5, 16  ;;  %v3794_v15 = vpack.c.bf16 %v3016_v6, %v3016_v6  ;;  %v3797_v16 = vpack.c.bf16 %v3019_v7, %v3019_v7 }
 0x1a9   : > { %v3074_v17 = vrot.slane %v3072_v3, 7  ;;  %v3080_v20 = vshrl.u32 %v3796_v9, 16  ;;  %v3083_v26 = vshll.u32 %v3796_v9, 16  ;;  %v3104_v23 = vshrl.u32 %v3799_v32, 16 }
 0x1aa   : > { %v3058_v59 = vrot.slane %v3056_v14, 7  ;;  %v3064_v62 = vshrl.u32 %v3794_v15, 16  ;;  %v3067_v21 = vshll.u32 %v3794_v15, 16  ;;  %v3107_v27 = vshll.u32 %v3799_v32, 16 }
 0x1ab   : > { %v3077_v63 = vor.u32 %v3075_v11, %v3074_v17  ;;  %v3078_v29 = vrot.slane %v3074_v17, 4  ;;  %v3082_v30 = vrot.slane %v3080_v20, 7  ;;  %v3106_v33 = vrot.slane %v3104_v23, 7 }
 0x1ac   : > { %v3061_v35 = vor.u32 %v3059_v38, %v3058_v59  ;;  %v3062_v36 = vrot.slane %v3058_v59, 4  ;;  %v3066_v40 = vrot.slane %v3064_v62, 7  ;;  %v3088_v22 = vshrl.u32 %v3797_v16, 16 }
 0x1ad   : > { %v3149_v53 = vsel %vm4532_vm5, %v3077_v63, %v3701_v12  ;;  %v3152_v41 = vsel %vm4493_vm4, %v3078_v29, %v3703_v13  ;;  %v3085_v42 = vor.u32 %v3083_v26, %v3082_v30  ;;  %v3086_v43 = vrot.slane %v3082_v30, 4 }
 0x1ae   : > { %3702 = vst [vmem:[%s4437_s18 + $0x18] sm:$0xf] %v3149_v53  ;;  %3704 = vst [vmem:[%s4437_s18 + $0x1c] sm:$0x1] %v3152_v41  ;;  %v3137_v46 = vsel %vm4532_vm5, %v3061_v35, %v3693_v19  ;;  %v3140_v18 = vsel %vm4493_vm4, %v3062_v36, %v3695_v24  ;;  %v3069_v47 = vor.u32 %v3067_v21, %v3066_v40  ;;  %v3070_v48 = vrot.slane %v3066_v40, 4 }
 0x1af   : > { %3694 = vst [vmem:[%s4437_s18 + $0x8] sm:$0xf] %v3137_v46  ;;  %3696 = vst [vmem:[%s4437_s18 + $0xc] sm:$0x1] %v3140_v18  ;;  %v3155_v52 = vsel %vm4532_vm5, %v3085_v42, %v3705_v34  ;;  %v3158_v50 = vsel %vm4493_vm4, %v3086_v43, %v3707_v39  ;;  %v3109_v25 = vor.u32 %v3107_v27, %v3106_v33  ;;  %v3110_v54 = vrot.slane %v3106_v33, 4 }
 0x1b0   : > { %3706 = vst [vmem:[%s4437_s18 + $0x20] sm:$0xf] %v3155_v52  ;;  %3708 = vst [vmem:[%s4437_s18 + $0x24] sm:$0x1] %v3158_v50  ;;  %v3143_v10 = vsel %vm4532_vm5, %v3069_v47, %v3697_v44  ;;  %v3146_v55 = vsel %vm4493_vm4, %v3070_v48, %v3699_v45  ;;  %v3090_v56 = vrot.slane %v3088_v22, 7  ;;  %v3091_v28 = vshll.u32 %v3797_v16, 16 }
 0x1b1   : > { %3698 = vst [vmem:[%s4437_s18 + $0x10] sm:$0xf] %v3143_v10  ;;  %3700 = vst [vmem:[%s4437_s18 + $0x14] sm:$0x1] %v3146_v55  ;;  %v3173_v57 = vsel %vm4532_vm5, %v3109_v25, %v3717_v49  ;;  %v3176_v58 = vsel %vm4493_vm4, %v3110_v54, %v3719_v51  ;;  %v3022_v0 = vmax.f32 %v5096_v4, 0.0  ;;  %v3020_v5 = vmax.f32 %v5098_v2, 0.0 }
 0x1b2   : > { %3718 = vst [vmem:[%s4437_s18 + $0x38] sm:$0xf] %v3173_v57  ;;  %3720 = vst [vmem:[%s4437_s18 + $0x3c] sm:$0x1] %v3176_v58  ;;  %v3093_v1 = vor.u32 %v3091_v28, %v3090_v56  ;;  %v3094_v60 = vrot.slane %v3090_v56, 4 }
 0x1b3   : > { %v3800_v7 = vpack.c.bf16 %v3022_v0, %v3022_v0  ;;  %v3798_v15 = vpack.c.bf16 %v3020_v5, %v3020_v5  ;;  %v3721_v35 = vld [vmem:[%s4437_s18 + $0x40] sm:$0xf]  ;;  %v3723_v36 = vld [vmem:[%s4437_s18 + $0x44] sm:$0x1]  ;;  %v3713_v45 = vld [vmem:[%s4437_s18 + $0x30] sm:$0xf] }
 0x1b4   : > { %v3161_v4 = vsel %vm4532_vm5, %v3093_v1, %v3709_v61  ;;  %v3164_v3 = vsel %vm4493_vm4, %v3094_v60, %v3711_v31  ;;  %v3715_v46 = vld [vmem:[%s4437_s18 + $0x34] sm:$0x1] }
 0x1b5   : > { %v3731_v11 = vld [vmem:[%s4437_s18 + $0x18] sm:$0x1]  ;;  %v3747_v9 = vld [vmem:[%s4437_s18 + $0x1c] sm:$0x1]  ;;  %3710 = vst [vmem:[%s4437_s18 + $0x28] sm:$0xf] %v3161_v4 }
 0x1b6   : > { %3712 = vst [vmem:[%s4437_s18 + $0x2c] sm:$0x1] %v3164_v3  ;;  %v3112_v2 = vshrl.u32 %v3800_v7, 16  ;;  %v3115_v32 = vshll.u32 %v3800_v7, 16  ;;  %v3196_v12 = vsel %vm4493_vm4, 0, %v3731_v11  ;;  %v3221_v13 = vsel %vm5146_vm9, 0, %v3747_v9 }
 0x1b7   : > { %v3727_v14 = vld [vmem:[%s4437_s18 + $0x8] sm:$0x1]  ;;  %v3743_v38 = vld [vmem:[%s4437_s18 + $0xc] sm:$0x1]  ;;  %3732 = vst [vmem:[%s4437_s18 + $0x18] sm:$0x1] %v3196_v12 }
 0x1b8   : > { %3748 = vst [vmem:[%s4437_s18 + $0x1c] sm:$0x1] %v3221_v13  ;;  %v3190_v16 = vsel %vm4493_vm4, 0, %v3727_v14  ;;  %v3215_v17 = vsel %vm5146_vm9, 0, %v3743_v38  ;;  %v3733_v19 = vld [vmem:[%s4437_s18 + $0x20] sm:$0x1] }
 0x1b9   : > { %v3749_v20 = vld [vmem:[%s4437_s18 + $0x24] sm:$0x1]  ;;  %3728 = vst [vmem:[%s4437_s18 + $0x8] sm:$0x1] %v3190_v16  ;;  %3744 = vst [vmem:[%s4437_s18 + $0xc] sm:$0x1] %v3215_v17 }
 0x1ba   : > { %v3199_v26 = vsel %vm4493_vm4, 0, %v3733_v19  ;;  %v3224_v23 = vsel %vm5146_vm9, 0, %v3749_v20  ;;  %v3729_v59 = vld [vmem:[%s4437_s18 + $0x10] sm:$0x1]  ;;  %v3745_v24 = vld [vmem:[%s4437_s18 + $0x14] sm:$0x1] }
 0x1bb   : > { %3734 = vst [vmem:[%s4437_s18 + $0x20] sm:$0x1] %v3199_v26  ;;  %3750 = vst [vmem:[%s4437_s18 + $0x24] sm:$0x1] %v3224_v23  ;;  %v3193_v62 = vsel %vm4493_vm4, 0, %v3729_v59  ;;  %v3218_v21 = vsel %vm5146_vm9, 0, %v3745_v24 }
 0x1bc   : > { %v3739_v27 = vld [vmem:[%s4437_s18 + $0x38] sm:$0x1]  ;;  %v3755_v63 = vld [vmem:[%s4437_s18 + $0x3c] sm:$0x1]  ;;  %3730 = vst [vmem:[%s4437_s18 + $0x10] sm:$0x1] %v3193_v62 }
 0x1bd   : > { %3746 = vst [vmem:[%s4437_s18 + $0x14] sm:$0x1] %v3218_v21  ;;  %v3208_v29 = vsel %vm4493_vm4, 0, %v3739_v27  ;;  %v3233_v30 = vsel %vm5146_vm9, 0, %v3755_v63  ;;  %v3114_v34 = vrot.slane %v3112_v2, 7  ;;  %v3096_v33 = vshrl.u32 %v3798_v15, 16 }
 0x1be   : > { %3740 = vst [vmem:[%s4437_s18 + $0x38] sm:$0x1] %v3208_v29  ;;  %3756 = vst [vmem:[%s4437_s18 + $0x3c] sm:$0x1] %v3233_v30  ;;  %v3099_v39 = vshll.u32 %v3798_v15, 16 }
 0x1bf   : > { %v3735_v40 = vld [vmem:[%s4437_s18 + $0x28] sm:$0x1]  ;;  %v3751_v22 = vld [vmem:[%s4437_s18 + $0x2c] sm:$0x1]  ;;  %v3117_v53 = vor.u32 %v3115_v32, %v3114_v34  ;;  %v3118_v41 = vrot.slane %v3114_v34, 4  ;;  %v3098_v42 = vrot.slane %v3096_v33, 7 }
 0x1c0   : > { %v3202_v43 = vsel %vm4493_vm4, 0, %v3735_v40  ;;  %v3227_v44 = vsel %vm5146_vm9, 0, %v3751_v22 }
 0x1c1   : > { %3736 = vst [vmem:[%s4437_s18 + $0x28] sm:$0x1] %v3202_v43  ;;  %3752 = vst [vmem:[%s4437_s18 + $0x2c] sm:$0x1] %v3227_v44  ;;  %v3179_v18 = vsel %vm4532_vm5, %v3117_v53, %v3721_v35  ;;  %v3182_v47 = vsel %vm4493_vm4, %v3118_v41, %v3723_v36  ;;  %v3101_v48 = vor.u32 %v3099_v39, %v3098_v42  ;;  %v3102_v49 = vrot.slane %v3098_v42, 4 }
 0x1c2   : > { %3722 = vst [vmem:[%s4437_s18 + $0x40] sm:$0xf] %v3179_v18  ;;  %3724 = vst [vmem:[%s4437_s18 + $0x44] sm:$0x1] %v3182_v47 }
 0x1c3   : > { %v3167_v51 = vsel %vm4532_vm5, %v3101_v48, %v3713_v45  ;;  %v3170_v52 = vsel %vm4493_vm4, %v3102_v49, %v3715_v46 }
 0x1c4   : > { %3714 = vst [vmem:[%s4437_s18 + $0x30] sm:$0xf] %v3167_v51  ;;  %3716 = vst [vmem:[%s4437_s18 + $0x34] sm:$0x1] %v3170_v52 }
 0x1c9   : > { %v3741_v50 = vld [vmem:[%s4437_s18 + $0x40] sm:$0x1]  ;;  %v3757_v25 = vld [vmem:[%s4437_s18 + $0x44] sm:$0x1] }
 0x1ca   : > { %v3211_v54 = vsel %vm4493_vm4, 0, %v3741_v50  ;;  %v3236_v10 = vsel %vm5146_vm9, 0, %v3757_v25 }
 0x1cb   : > { %3742 = vst [vmem:[%s4437_s18 + $0x40] sm:$0x1] %v3211_v54  ;;  %3758 = vst [vmem:[%s4437_s18 + $0x44] sm:$0x1] %v3236_v10  ;;  %v3737_v55 = vld [vmem:[%s4437_s18 + $0x30] sm:$0x1] }
 0x1cc   : > { %v3753_v56 = vld [vmem:[%s4437_s18 + $0x34] sm:$0x1]  ;;  %v3205_v8 = vsel %vm4493_vm4, 0, %v3737_v55 }
 0x1cd   : > { %v3230_v28 = vsel %vm5146_vm9, 0, %v3753_v56  ;;  %3738 = vst [vmem:[%s4437_s18 + $0x30] sm:$0x1] %v3205_v8 }
 0x1ce   : > { %3754 = vst [vmem:[%s4437_s18 + $0x34] sm:$0x1] %v3230_v28 }
 0x1cf PF: > { %s16_s23 = sadd.s32 1, %s4354_s23   ;;  %s5260_s21 = smov %s4350_s22 }
 0x1d0   : > { %p13_p5 = scmp.ge.s32.totalorder %s16_s23, 4   ;;  %s5261_s22 = smov %s5263_s24 }
 0x1d2   :  { %15 = sbr.rel (!%p13_p5) target bundleno = 2 (0x2), region = 104 }

</bundles_post_ra>
